<compile_context>
chip_gen: v7x
topology: tpu7x:2x2x1
jax: 0.10.0
libtpu: 0.0.40
codegen_flags: <defaults>
</compile_context>

<pallas_src>
import numpy as np
import jax
import jax.numpy as jnp
from jax import lax
from jax.experimental import pallas as pl
from jax.experimental.pallas import tpu as pltpu

CONV_OC = 10
KH = KW = 5
POOL = 2
H_IN = W_IN = 28                      # forced by fc2 input size: 10 * 12 * 12 = 1440
H_CONV = H_IN - KH + 1                # 24
W_CONV = W_IN - KW + 1                # 24
H_POOL = H_CONV // POOL               # 12
W_POOL = W_CONV // POOL               # 12
FC_IN = CONV_OC * H_POOL * W_POOL     # 1440

S_TAPS = POOL + KH - 1                # 6 input rows feed one pooled output row
ROW_K = S_TAPS * W_IN                 # 168 packed-input lanes per channel
LANE_GRP = 128                        # one pool phase: (ow, oc) = 120 lanes, padded to 128
N_PHASE = POOL * POOL                 # 4
CONV_N = N_PHASE * LANE_GRP           # 512 output lanes of the fused conv matmul
POS_LANES = W_POOL * CONV_OC          # 120 valid (ow, oc) lanes


# --------------------------------------------------------------------------- #
# Kernel
# --------------------------------------------------------------------------- #
def _fused_kernel(x_ref, wc_ref, cb_ref, wf_ref, fb_ref, o_ref):
    """conv5x5 + 2x2 maxpool + relu + fc2, one batch tile per grid step.

    x_ref : (12, TB, C*168)  packed rows: [oh, b, c*168 + s*28 + j] = x[b, c, 2*oh+s, j]
    wc_ref: (C*168, 512)     banded conv weight; col = py*256 + px*128 + ow*10 + oc
    cb_ref: (1, 128)         conv bias broadcast over (ow, oc) lanes (0 past lane 120)
    wf_ref: (12, 128, NC)    fc weight regrouped per pooled row oh (0 past lane 120)
    fb_ref: (1, NC)          fc bias
    o_ref : (TB, NC)         logits
    """
    oh_dim, tb, k = x_ref.shape
    nc = o_ref.shape[-1]

    # ---- conv (all 10 channels, all 4 pool phases) in ONE MXU matmul ----
    # Trivial leading-dim merge (tb is a multiple of 8): rows = oh*TB + b.
    xs = x_ref[...].reshape(oh_dim * tb, k)
    acc = jnp.dot(xs, wc_ref[...], preferred_element_type=jnp.float32)   # (12*TB, 512)

    # ---- 2x2 max-pool = max over the four 128-lane-aligned phase quarters ----
    m = jnp.maximum(jnp.maximum(acc[:, 0:128], acc[:, 128:256]),
                    jnp.maximum(acc[:, 256:384], acc[:, 384:512]))
    # Per-channel bias commutes with the max; then relu.  Lanes = ow*10 + oc.
    pooled = jnp.maximum(m + cb_ref[...], 0.0)                           # (12*TB, 128)

    # ---- fc2: contract (oh, ow, oc) as 12 wide-K (K=128) matmuls ----
    out = jnp.zeros((tb, nc), jnp.float32)
    for oh in range(oh_dim):
        out = out + jnp.dot(pooled[oh * tb:(oh + 1) * tb, :], wf_ref[oh],
                            preferred_element_type=jnp.float32)
    o_ref[...] = out + fb_ref[...]


# --------------------------------------------------------------------------- #
# Wrapper-side (constant-shaped) packing helpers
# --------------------------------------------------------------------------- #
def _pack_inputs(x):
    """(B, C, 28, 28) -> (12, B, C*168): [oh, b, c*168 + s*28 + j] = x[b, c, 2*oh+s, j]."""
    B, C, _, _ = x.shape
    rows = 2 * np.arange(H_POOL)[:, None] + np.arange(S_TAPS)[None, :]   # (12, 6), max 27
    xg = x[:, :, rows, :]                                                # (B, C, 12, 6, 28)
    xg = jnp.transpose(xg, (2, 0, 1, 3, 4))                              # (12, B, C, 6, 28)
    return xg.reshape(H_POOL, B, C * ROW_K)


def _pack_conv_weight(conv_w):
    """(10, C, 5, 5) -> (C*168, 512): im2col + the 4 pool phases folded into a banded matrix."""
    C = conv_w.shape[1]
    k = np.arange(C * ROW_K)
    c_k = k // ROW_K
    s_k = (k % ROW_K) // W_IN
    j_k = k % W_IN
    col = np.arange(CONV_N)
    py = col // (2 * LANE_GRP)
    px = (col % (2 * LANE_GRP)) // LANE_GRP
    rem = col % LANE_GRP
    ow = rem // CONV_OC
    oc = rem % CONV_OC
    dy = s_k[:, None] - py[None, :]
    dx = j_k[:, None] - (2 * ow + px)[None, :]
    valid = (rem[None, :] < POS_LANES) & (dy >= 0) & (dy < KH) & (dx >= 0) & (dx < KW)
    oc_i = np.broadcast_to(oc[None, :], valid.shape)
    c_i = np.broadcast_to(c_k[:, None], valid.shape)
    dy_i = np.where(valid, dy, 0)
    dx_i = np.where(valid, dx, 0)
    w = conv_w[oc_i, c_i, dy_i, dx_i]                                    # (C*168, 512) gather
    return jnp.where(valid, w, 0.0).astype(jnp.float32)


def _pack_conv_bias(conv_b):
    rem = np.arange(LANE_GRP)
    oc = rem % CONV_OC
    return jnp.where(rem < POS_LANES, conv_b[oc], 0.0).reshape(1, LANE_GRP).astype(jnp.float32)


def _pack_fc_weight(fc_w):
    """(NC, 1440) -> (12, 128, NC): wf[oh, ow*10+oc, n] = fc_w[n, oc*144 + oh*12 + ow]."""
    oh = np.arange(H_POOL)[:, None]
    rem = np.arange(LANE_GRP)[None, :]
    ow = rem // CONV_OC
    oc = rem % CONV_OC
    valid = rem < POS_LANES
    flat = np.where(valid, oc * (H_POOL * W_POOL) + oh * W_POOL + ow, 0)  # (12, 128)
    wf = jnp.transpose(fc_w, (1, 0))[flat]                                # (12, 128, NC)
    return jnp.where(valid[:, :, None], wf, 0.0).astype(jnp.float32)


# --------------------------------------------------------------------------- #
# Forward pass
# --------------------------------------------------------------------------- #
def cnn_mnist_sgl_lyr_forward(x_nchw, conv_w, conv_b, fc_w, fc_b):
    """Pallas forward pass of CNNMnistSglLyr. x_nchw: (B, C, 28, 28) float32."""
    B, C, H, W = x_nchw.shape
    assert H == H_IN and W == W_IN, "fc2(1440, ...) implies 28x28 spatial input"
    num_classes = fc_w.shape[0]
    K = C * ROW_K

    xp = _pack_inputs(x_nchw.astype(jnp.float32))                 # (12, B, K)
    wc = _pack_conv_weight(conv_w.astype(jnp.float32))            # (K, 512)
    cb = _pack_conv_bias(conv_b.astype(jnp.float32))              # (1, 128)
    wf = _pack_fc_weight(fc_w.astype(jnp.float32))                # (12, 128, NC)
    fb = fc_b.reshape(1, num_classes).astype(jnp.float32)         # (1, NC)

    # Batch tile: multiple of 8 (sublane-aligned, so every in-kernel reshape /
    # slice is layout-trivial), capped at 32 for VMEM, and chosen so the grid
    # has >= 2 steps once B > 8 (feeds both v7x TensorCores).
    if B <= 8:
        TB = 8
    else:
        TB = min(32, 8 * ((B + 15) // 16))
    n_blk = -(-B // TB)
    B_pad = n_blk * TB
    if B_pad != B:
        xp = jnp.pad(xp, ((0, 0), (0, B_pad - B), (0, 0)))

    out = pl.pallas_call(
        _fused_kernel,
        out_shape=jax.ShapeDtypeStruct((B_pad, num_classes), jnp.float32),
        grid_spec=pltpu.PrefetchScalarGridSpec(
            num_scalar_prefetch=0,
            grid=(n_blk,),
            in_specs=[
                pl.BlockSpec((H_POOL, TB, K), lambda i: (0, i, 0)),
                pl.BlockSpec((K, CONV_N), lambda i: (0, 0)),
                pl.BlockSpec((1, LANE_GRP), lambda i: (0, 0)),
                pl.BlockSpec((H_POOL, LANE_GRP, num_classes), lambda i: (0, 0, 0)),
                pl.BlockSpec((1, num_classes), lambda i: (0, 0)),
            ],
            out_specs=pl.BlockSpec((TB, num_classes), lambda i: (i, 0)),
        ),
        compiler_params=pltpu.CompilerParams(
            dimension_semantics=("parallel",),
            vmem_limit_bytes=32 * 1024 * 1024),
    )(xp, wc, cb, wf, fb)
    return out[:B]


# --------------------------------------------------------------------------- #
# Reference + test
# --------------------------------------------------------------------------- #
def reference_forward(x, conv_w, conv_b, fc_w, fc_b):
    """Plain-JAX reference mirroring the PyTorch forward exactly."""
    y = lax.conv_general_dilated(x, conv_w, (1, 1), 'VALID',
                                 dimension_numbers=('NCHW', 'OIHW', 'NCHW'))
    y = y + conv_b[None, :, None, None]
    y = lax.reduce_window(y, -jnp.inf, lax.max, (1, 1, 2, 2), (1, 1, 2, 2), 'VALID')
    y = jnp.maximum(y, 0.0)
    y = y.reshape(y.shape[0], -1)
    return y @ fc_w.T + fc_b


if __name__ == "__main__":
    B, C, num_classes = 2, 1, 10

    key = jax.random.PRNGKey(0)
    kx, k1, k2, k3, k4 = jax.random.split(key, 5)

    x = jax.random.normal(kx, (B, C, H_IN, W_IN), jnp.float32)

    # Deterministic PyTorch-style uniform init (bounds only; synthetic weights).
    kc = 1.0 / np.sqrt(C * KH * KW)
    conv_w = jax.random.uniform(k1, (CONV_OC, C, KH, KW), jnp.float32, -kc, kc)
    conv_b = jax.random.uniform(k2, (CONV_OC,), jnp.float32, -kc, kc)
    kf = 1.0 / np.sqrt(FC_IN)
    fc_w = jax.random.uniform(k3, (num_classes, FC_IN), jnp.float32, -kf, kf)
    fc_b = jax.random.uniform(k4, (num_classes,), jnp.float32, -kf, kf)

    fwd = jax.jit(cnn_mnist_sgl_lyr_forward)
    out = jax.block_until_ready(fwd(x, conv_w, conv_b, fc_w, fc_b))

    ref = reference_forward(x, conv_w, conv_b, fc_w, fc_b)
    assert out.shape == (B, num_classes)
    np.testing.assert_allclose(np.asarray(out), np.asarray(ref), rtol=1e-4, atol=1e-4)
    print("KERNEL_OK")
</pallas_src>

<mosaic_0001>
module attributes {stable_mosaic.version = 11 : i64} {
  func.func private @main(%arg0: i32) attributes {dimension_semantics = [#tpu.dimension_semantics<core_parallel>], iteration_bounds = array<i64: 2>, tpu.core_type = #tpu.core_type<sc_scalar_subcore>, window_params = []} {
    return
  }
}

module attributes {stable_mosaic.version = 11 : i64} {
  func.func private @main(%arg0: i32) attributes {dimension_semantics = [#tpu.dimension_semantics<core_parallel>], iteration_bounds = array<i64: 2>, tpu.core_type = #tpu.core_type<sc_scalar_subcore>, window_params = []} {
    return
  }
}

module attributes {stable_mosaic.version = 11 : i64} {
  func.func @_fused_kernel(%arg0: i32, %arg1: memref<12x8x168xf32, #tpu.memory_space<vmem>>, %arg2: memref<168x512xf32, #tpu.memory_space<vmem>>, %arg3: memref<1x128xf32, #tpu.memory_space<vmem>>, %arg4: memref<12x128x10xf32, #tpu.memory_space<vmem>>, %arg5: memref<1x10xf32, #tpu.memory_space<vmem>>, %arg6: memref<8x10xf32, #tpu.memory_space<vmem>>) attributes {dimension_semantics = [#tpu.dimension_semantics<parallel>], iteration_bounds = array<i64: 1>, scalar_prefetch = 0 : i64, scratch_operands = 0 : i64, tpu.core_type = #tpu.core_type<tc>, window_params = [{transform_indices = @transform_0, window_bounds = array<i64: 12, 8, 168>}, {pipeline_mode = #tpu.pipeline_mode<synchronous>, transform_indices = @transform_1, window_bounds = array<i64: 168, 512>}, {pipeline_mode = #tpu.pipeline_mode<synchronous>, transform_indices = @transform_2, window_bounds = array<i64: 1, 128>}, {pipeline_mode = #tpu.pipeline_mode<synchronous>, transform_indices = @transform_3, window_bounds = array<i64: 12, 128, 10>}, {pipeline_mode = #tpu.pipeline_mode<synchronous>, transform_indices = @transform_4, window_bounds = array<i64: 1, 10>}, {transform_indices = @transform_5, window_bounds = array<i64: 8, 10>}]} {
    %c0 = arith.constant 0 : index
    %c0_0 = arith.constant 0 : index
    %c0_1 = arith.constant 0 : index
    %0 = vector.load %arg1[%c0, %c0_0, %c0_1] : memref<12x8x168xf32, #tpu.memory_space<vmem>>, vector<12x8x168xf32>
    %1 = vector.shape_cast %0 : vector<12x8x168xf32> to vector<96x168xf32>
    %c0_2 = arith.constant 0 : index
    %c0_3 = arith.constant 0 : index
    %2 = vector.load %arg2[%c0_2, %c0_3] : memref<168x512xf32, #tpu.memory_space<vmem>>, vector<168x512xf32>
    %cst = arith.constant dense<0.000000e+00> : vector<96x512xf32>
    %3 = tpu.matmul %1, %2, %cst {dimension_numbers = #tpu.dot_dimension_numbers<[1], [0], [0], [1], [0, 0, 1, 1], [], []>} : vector<96x168xf32>, vector<168x512xf32>, vector<96x512xf32> -> vector<96x512xf32>
    %4 = vector.extract_strided_slice %3 {offsets = [0, 0], sizes = [96, 128], strides = [1, 1]} : vector<96x512xf32> to vector<96x128xf32>
    %5 = vector.extract_strided_slice %3 {offsets = [0, 128], sizes = [96, 128], strides = [1, 1]} : vector<96x512xf32> to vector<96x128xf32>
    %6 = arith.maximumf %4, %5 : vector<96x128xf32>
    %7 = vector.extract_strided_slice %3 {offsets = [0, 256], sizes = [96, 128], strides = [1, 1]} : vector<96x512xf32> to vector<96x128xf32>
    %8 = vector.extract_strided_slice %3 {offsets = [0, 384], sizes = [96, 128], strides = [1, 1]} : vector<96x512xf32> to vector<96x128xf32>
    %9 = arith.maximumf %7, %8 : vector<96x128xf32>
    %10 = arith.maximumf %6, %9 : vector<96x128xf32>
    %c0_4 = arith.constant 0 : index
    %c0_5 = arith.constant 0 : index
    %11 = vector.load %arg3[%c0_4, %c0_5] : memref<1x128xf32, #tpu.memory_space<vmem>>, vector<1x128xf32>
    %12 = vector.broadcast %11 : vector<1x128xf32> to vector<96x128xf32>
    %13 = arith.addf %10, %12 : vector<96x128xf32>
    %cst_6 = arith.constant 0.000000e+00 : f32
    %14 = vector.broadcast %cst_6 : f32 to vector<96x128xf32>
    %15 = arith.maximumf %13, %14 : vector<96x128xf32>
    %cst_7 = arith.constant 0.000000e+00 : f32
    %16 = vector.broadcast %cst_7 : f32 to vector<8x10xf32>
    %17 = vector.extract_strided_slice %15 {offsets = [0, 0], sizes = [8, 128], strides = [1, 1]} : vector<96x128xf32> to vector<8x128xf32>
    %c0_8 = arith.constant 0 : index
    %c0_9 = arith.constant 0 : index
    %c0_10 = arith.constant 0 : index
    %18 = vector.load %arg4[%c0_8, %c0_9, %c0_10] : memref<12x128x10xf32, #tpu.memory_space<vmem>>, vector<1x128x10xf32>
    %19 = vector.shape_cast %18 : vector<1x128x10xf32> to vector<128x10xf32>
    %cst_11 = arith.constant dense<0.000000e+00> : vector<8x10xf32>
    %20 = tpu.matmul %17, %19, %cst_11 {dimension_numbers = #tpu.dot_dimension_numbers<[1], [0], [0], [1], [0, 0, 1, 1], [], []>} : vector<8x128xf32>, vector<128x10xf32>, vector<8x10xf32> -> vector<8x10xf32>
    %21 = arith.addf %16, %20 : vector<8x10xf32>
    %22 = vector.extract_strided_slice %15 {offsets = [8, 0], sizes = [8, 128], strides = [1, 1]} : vector<96x128xf32> to vector<8x128xf32>
    %c1 = arith.constant 1 : index
    %c0_12 = arith.constant 0 : index
    %c0_13 = arith.constant 0 : index
    %23 = vector.load %arg4[%c1, %c0_12, %c0_13] : memref<12x128x10xf32, #tpu.memory_space<vmem>>, vector<1x128x10xf32>
    %24 = vector.shape_cast %23 : vector<1x128x10xf32> to vector<128x10xf32>
    %cst_14 = arith.constant dense<0.000000e+00> : vector<8x10xf32>
    %25 = tpu.matmul %22, %24, %cst_14 {dimension_numbers = #tpu.dot_dimension_numbers<[1], [0], [0], [1], [0, 0, 1, 1], [], []>} : vector<8x128xf32>, vector<128x10xf32>, vector<8x10xf32> -> vector<8x10xf32>
    %26 = arith.addf %21, %25 : vector<8x10xf32>
    %27 = vector.extract_strided_slice %15 {offsets = [16, 0], sizes = [8, 128], strides = [1, 1]} : vector<96x128xf32> to vector<8x128xf32>
    %c2 = arith.constant 2 : index
    %c0_15 = arith.constant 0 : index
    %c0_16 = arith.constant 0 : index
    %28 = vector.load %arg4[%c2, %c0_15, %c0_16] : memref<12x128x10xf32, #tpu.memory_space<vmem>>, vector<1x128x10xf32>
    %29 = vector.shape_cast %28 : vector<1x128x10xf32> to vector<128x10xf32>
    %cst_17 = arith.constant dense<0.000000e+00> : vector<8x10xf32>
    %30 = tpu.matmul %27, %29, %cst_17 {dimension_numbers = #tpu.dot_dimension_numbers<[1], [0], [0], [1], [0, 0, 1, 1], [], []>} : vector<8x128xf32>, vector<128x10xf32>, vector<8x10xf32> -> vector<8x10xf32>
    %31 = arith.addf %26, %30 : vector<8x10xf32>
    %32 = vector.extract_strided_slice %15 {offsets = [24, 0], sizes = [8, 128], strides = [1, 1]} : vector<96x128xf32> to vector<8x128xf32>
    %c3 = arith.constant 3 : index
    %c0_18 = arith.constant 0 : index
    %c0_19 = arith.constant 0 : index
    %33 = vector.load %arg4[%c3, %c0_18, %c0_19] : memref<12x128x10xf32, #tpu.memory_space<vmem>>, vector<1x128x10xf32>
    %34 = vector.shape_cast %33 : vector<1x128x10xf32> to vector<128x10xf32>
    %cst_20 = arith.constant dense<0.000000e+00> : vector<8x10xf32>
    %35 = tpu.matmul %32, %34, %cst_20 {dimension_numbers = #tpu.dot_dimension_numbers<[1], [0], [0], [1], [0, 0, 1, 1], [], []>} : vector<8x128xf32>, vector<128x10xf32>, vector<8x10xf32> -> vector<8x10xf32>
    %36 = arith.addf %31, %35 : vector<8x10xf32>
    %37 = vector.extract_strided_slice %15 {offsets = [32, 0], sizes = [8, 128], strides = [1, 1]} : vector<96x128xf32> to vector<8x128xf32>
    %c4 = arith.constant 4 : index
    %c0_21 = arith.constant 0 : index
    %c0_22 = arith.constant 0 : index
    %38 = vector.load %arg4[%c4, %c0_21, %c0_22] : memref<12x128x10xf32, #tpu.memory_space<vmem>>, vector<1x128x10xf32>
    %39 = vector.shape_cast %38 : vector<1x128x10xf32> to vector<128x10xf32>
    %cst_23 = arith.constant dense<0.000000e+00> : vector<8x10xf32>
    %40 = tpu.matmul %37, %39, %cst_23 {dimension_numbers = #tpu.dot_dimension_numbers<[1], [0], [0], [1], [0, 0, 1, 1], [], []>} : vector<8x128xf32>, vector<128x10xf32>, vector<8x10xf32> -> vector<8x10xf32>
    %41 = arith.addf %36, %40 : vector<8x10xf32>
    %42 = vector.extract_strided_slice %15 {offsets = [40, 0], sizes = [8, 128], strides = [1, 1]} : vector<96x128xf32> to vector<8x128xf32>
    %c5 = arith.constant 5 : index
    %c0_24 = arith.constant 0 : index
    %c0_25 = arith.constant 0 : index
    %43 = vector.load %arg4[%c5, %c0_24, %c0_25] : memref<12x128x10xf32, #tpu.memory_space<vmem>>, vector<1x128x10xf32>
    %44 = vector.shape_cast %43 : vector<1x128x10xf32> to vector<128x10xf32>
    %cst_26 = arith.constant dense<0.000000e+00> : vector<8x10xf32>
    %45 = tpu.matmul %42, %44, %cst_26 {dimension_numbers = #tpu.dot_dimension_numbers<[1], [0], [0], [1], [0, 0, 1, 1], [], []>} : vector<8x128xf32>, vector<128x10xf32>, vector<8x10xf32> -> vector<8x10xf32>
    %46 = arith.addf %41, %45 : vector<8x10xf32>
    %47 = vector.extract_strided_slice %15 {offsets = [48, 0], sizes = [8, 128], strides = [1, 1]} : vector<96x128xf32> to vector<8x128xf32>
    %c6 = arith.constant 6 : index
    %c0_27 = arith.constant 0 : index
    %c0_28 = arith.constant 0 : index
    %48 = vector.load %arg4[%c6, %c0_27, %c0_28] : memref<12x128x10xf32, #tpu.memory_space<vmem>>, vector<1x128x10xf32>
    %49 = vector.shape_cast %48 : vector<1x128x10xf32> to vector<128x10xf32>
    %cst_29 = arith.constant dense<0.000000e+00> : vector<8x10xf32>
    %50 = tpu.matmul %47, %49, %cst_29 {dimension_numbers = #tpu.dot_dimension_numbers<[1], [0], [0], [1], [0, 0, 1, 1], [], []>} : vector<8x128xf32>, vector<128x10xf32>, vector<8x10xf32> -> vector<8x10xf32>
    %51 = arith.addf %46, %50 : vector<8x10xf32>
    %52 = vector.extract_strided_slice %15 {offsets = [56, 0], sizes = [8, 128], strides = [1, 1]} : vector<96x128xf32> to vector<8x128xf32>
    %c7 = arith.constant 7 : index
    %c0_30 = arith.constant 0 : index
    %c0_31 = arith.constant 0 : index
    %53 = vector.load %arg4[%c7, %c0_30, %c0_31] : memref<12x128x10xf32, #tpu.memory_space<vmem>>, vector<1x128x10xf32>
    %54 = vector.shape_cast %53 : vector<1x128x10xf32> to vector<128x10xf32>
    %cst_32 = arith.constant dense<0.000000e+00> : vector<8x10xf32>
    %55 = tpu.matmul %52, %54, %cst_32 {dimension_numbers = #tpu.dot_dimension_numbers<[1], [0], [0], [1], [0, 0, 1, 1], [], []>} : vector<8x128xf32>, vector<128x10xf32>, vector<8x10xf32> -> vector<8x10xf32>
    %56 = arith.addf %51, %55 : vector<8x10xf32>
    %57 = vector.extract_strided_slice %15 {offsets = [64, 0], sizes = [8, 128], strides = [1, 1]} : vector<96x128xf32> to vector<8x128xf32>
    %c8 = arith.constant 8 : index
    %c0_33 = arith.constant 0 : index
    %c0_34 = arith.constant 0 : index
    %58 = vector.load %arg4[%c8, %c0_33, %c0_34] : memref<12x128x10xf32, #tpu.memory_space<vmem>>, vector<1x128x10xf32>
    %59 = vector.shape_cast %58 : vector<1x128x10xf32> to vector<128x10xf32>
    %cst_35 = arith.constant dense<0.000000e+00> : vector<8x10xf32>
    %60 = tpu.matmul %57, %59, %cst_35 {dimension_numbers = #tpu.dot_dimension_numbers<[1], [0], [0], [1], [0, 0, 1, 1], [], []>} : vector<8x128xf32>, vector<128x10xf32>, vector<8x10xf32> -> vector<8x10xf32>
    %61 = arith.addf %56, %60 : vector<8x10xf32>
    %62 = vector.extract_strided_slice %15 {offsets = [72, 0], sizes = [8, 128], strides = [1, 1]} : vector<96x128xf32> to vector<8x128xf32>
    %c9 = arith.constant 9 : index
    %c0_36 = arith.constant 0 : index
    %c0_37 = arith.constant 0 : index
    %63 = vector.load %arg4[%c9, %c0_36, %c0_37] : memref<12x128x10xf32, #tpu.memory_space<vmem>>, vector<1x128x10xf32>
    %64 = vector.shape_cast %63 : vector<1x128x10xf32> to vector<128x10xf32>
    %cst_38 = arith.constant dense<0.000000e+00> : vector<8x10xf32>
    %65 = tpu.matmul %62, %64, %cst_38 {dimension_numbers = #tpu.dot_dimension_numbers<[1], [0], [0], [1], [0, 0, 1, 1], [], []>} : vector<8x128xf32>, vector<128x10xf32>, vector<8x10xf32> -> vector<8x10xf32>
    %66 = arith.addf %61, %65 : vector<8x10xf32>
    %67 = vector.extract_strided_slice %15 {offsets = [80, 0], sizes = [8, 128], strides = [1, 1]} : vector<96x128xf32> to vector<8x128xf32>
    %c10 = arith.constant 10 : index
    %c0_39 = arith.constant 0 : index
    %c0_40 = arith.constant 0 : index
    %68 = vector.load %arg4[%c10, %c0_39, %c0_40] : memref<12x128x10xf32, #tpu.memory_space<vmem>>, vector<1x128x10xf32>
    %69 = vector.shape_cast %68 : vector<1x128x10xf32> to vector<128x10xf32>
    %cst_41 = arith.constant dense<0.000000e+00> : vector<8x10xf32>
    %70 = tpu.matmul %67, %69, %cst_41 {dimension_numbers = #tpu.dot_dimension_numbers<[1], [0], [0], [1], [0, 0, 1, 1], [], []>} : vector<8x128xf32>, vector<128x10xf32>, vector<8x10xf32> -> vector<8x10xf32>
    %71 = arith.addf %66, %70 : vector<8x10xf32>
    %72 = vector.extract_strided_slice %15 {offsets = [88, 0], sizes = [8, 128], strides = [1, 1]} : vector<96x128xf32> to vector<8x128xf32>
    %c11 = arith.constant 11 : index
    %c0_42 = arith.constant 0 : index
    %c0_43 = arith.constant 0 : index
    %73 = vector.load %arg4[%c11, %c0_42, %c0_43] : memref<12x128x10xf32, #tpu.memory_space<vmem>>, vector<1x128x10xf32>
    %74 = vector.shape_cast %73 : vector<1x128x10xf32> to vector<128x10xf32>
    %cst_44 = arith.constant dense<0.000000e+00> : vector<8x10xf32>
    %75 = tpu.matmul %72, %74, %cst_44 {dimension_numbers = #tpu.dot_dimension_numbers<[1], [0], [0], [1], [0, 0, 1, 1], [], []>} : vector<8x128xf32>, vector<128x10xf32>, vector<8x10xf32> -> vector<8x10xf32>
    %76 = arith.addf %71, %75 : vector<8x10xf32>
    %c0_45 = arith.constant 0 : index
    %c0_46 = arith.constant 0 : index
    %77 = vector.load %arg5[%c0_45, %c0_46] : memref<1x10xf32, #tpu.memory_space<vmem>>, vector<1x10xf32>
    %78 = vector.broadcast %77 : vector<1x10xf32> to vector<8x10xf32>
    %79 = arith.addf %76, %78 : vector<8x10xf32>
    %c0_47 = arith.constant 0 : index
    %c0_48 = arith.constant 0 : index
    %80 = vector.load %arg6[%c0_47, %c0_48] : memref<8x10xf32, #tpu.memory_space<vmem>>, vector<8x10xf32>
    tpu.vector_store %arg6[%c0_47, %c0_48], %79 {strides = array<i32>} : memref<8x10xf32, #tpu.memory_space<vmem>>, vector<8x10xf32>,
    return
  }
  func.func @transform_0(%arg0: i32) -> (i32, i32, i32) {
    %c0_i32 = arith.constant 0 : i32
    %c0_i32_0 = arith.constant 0 : i32
    %c0_i32_1 = arith.constant 0 : i32
    return %c0_i32, %arg0, %c0_i32_0 : i32, i32, i32
  }
  func.func @transform_1(%arg0: i32) -> (i32, i32) {
    %c0_i32 = arith.constant 0 : i32
    %c0_i32_0 = arith.constant 0 : i32
    %c0_i32_1 = arith.constant 0 : i32
    return %c0_i32, %c0_i32_0 : i32, i32
  }
  func.func @transform_2(%arg0: i32) -> (i32, i32) {
    %c0_i32 = arith.constant 0 : i32
    %c0_i32_0 = arith.constant 0 : i32
    %c0_i32_1 = arith.constant 0 : i32
    return %c0_i32, %c0_i32_0 : i32, i32
  }
  func.func @transform_3(%arg0: i32) -> (i32, i32, i32) {
    %c0_i32 = arith.constant 0 : i32
    %c0_i32_0 = arith.constant 0 : i32
    %c0_i32_1 = arith.constant 0 : i32
    %c0_i32_2 = arith.constant 0 : i32
    return %c0_i32, %c0_i32_0, %c0_i32_1 : i32, i32, i32
  }
  func.func @transform_4(%arg0: i32) -> (i32, i32) {
    %c0_i32 = arith.constant 0 : i32
    %c0_i32_0 = arith.constant 0 : i32
    %c0_i32_1 = arith.constant 0 : i32
    return %c0_i32, %c0_i32_0 : i32, i32
  }
  func.func @transform_5(%arg0: i32) -> (i32, i32) {
    %c0_i32 = arith.constant 0 : i32
    %c0_i32_0 = arith.constant 0 : i32
    return %arg0, %c0_i32 : i32, i32
  }
}

</mosaic_0001>

<bundles_post_ra>
// kernel: cnn_mnist_sgl_lyr_forward.1
= control target key start
LH: loop header
LB: loop body
LE: loop exit
PB: predicated region body
PF: predicated region fallthrough
CT: control target
= control target key end

     0   :  { %vm128_vm0 = vcmask 326656   ;;  %vm2771_vm1 = vmmov 0   ;;  %vm1567_vm2 = vcmask 80896   ;;  %s3900_s1 = inlined_call_operand.vmem [shape: f32[168,512], index: 1, kind: input, shape index: {}]   ;;  %s3901_s0 = inlined_call_operand.vmem [shape: f32[12,8,168], index: 0, kind: input, shape index: {}]   ;;  %s3902_s3 = inlined_call_operand.vmem [shape: f32[12,128,10], index: 3, kind: input, shape index: {}]   ;;  %s3903_s2 = inlined_call_operand.vmem [shape: f32[1,128], index: 2, kind: input, shape index: {}]   ;;  %s3904_s4 = inlined_call_operand.vmem [shape: f32[1,10], index: 4, kind: input, shape index: {}]   ;;  %s3905_s5 = inlined_call_operand.vmem [shape: f32[8,10], index: 5, kind: output, shape index: {}]  }
   0x1   :  { %v45_v0 = vld [vmem:[%s3900_s1 + $0x8] sm:$0xff]  ;;  %v47_v2 = vld [vmem:[%s3900_s1 + $0x18] sm:$0xff]  ;;  %v44_v5 = vld [vmem:[%s3900_s1] sm:$0xff] }
   0x2   :  { %v49_v1 = vld [vmem:[%s3900_s1 + $0x28] sm:$0xff]  ;;  %v51_v4 = vld [vmem:[%s3900_s1 + $0x38] sm:$0xff]  ;;  %v48_v6 = vld [vmem:[%s3900_s1 + $0x20] sm:$0xff] }
   0x3   :  { %v2399_v3 = vpack.c.bf16 %v49_v1, %v45_v0  ;;  %v2439_v7 = vpack.c.bf16 %v51_v4, %v47_v2  ;;  %v2401_v8 = vpack.c.bf16 %v48_v6, %v44_v5  ;;  %v46_v9 = vld [vmem:[%s3900_s1 + $0x10] sm:$0xff]  ;;  %v53_v11 = vld [vmem:[%s3900_s1 + $0x48] sm:$0xff]  ;;  %v55_v14 = vld [vmem:[%s3900_s1 + $0x58] sm:$0xff] }
   0x4   :  { %v50_v10 = vld [vmem:[%s3900_s1 + $0x30] sm:$0xff]  ;;  %v57_v13 = vld [vmem:[%s3900_s1 + $0x68] sm:$0xff]  ;;  %v59_v15 = vld [vmem:[%s3900_s1 + $0x78] sm:$0xff] }
   0x5   :  { %2400 = vmatprep.subr.bf16.mxu0 %v2399_v3  ;;  %v2441_v12 = vpack.c.bf16 %v50_v10, %v46_v9  ;;  %2440 = vmatprep.subr.bf16.mxu1 %v2439_v7  ;;  %v2403_v16 = vpack.c.bf16 %v57_v13, %v53_v11  ;;  %v2443_v17 = vpack.c.bf16 %v59_v15, %v55_v14  ;;  %v52_v18 = vld [vmem:[%s3900_s1 + $0x40] sm:$0xff]  ;;  %v54_v20 = vld [vmem:[%s3900_s1 + $0x50] sm:$0xff]  ;;  %v61_v23 = vld [vmem:[%s3900_s1 + $0x88] sm:$0xff] }
   0x6   :  { %2402 = vmatpush1.bf16.msra.mxu0 %v2401_v8  ;;  %v56_v19 = vld [vmem:[%s3900_s1 + $0x60] sm:$0xff]  ;;  %v58_v22 = vld [vmem:[%s3900_s1 + $0x70] sm:$0xff]  ;;  %v65_v24 = vld [vmem:[%s3900_s1 + $0xa8] sm:$0xff] }
   0x7   :  { %2442 = vmatpush1.bf16.msra.mxu1 %v2441_v12  ;;  %v2405_v21 = vpack.c.bf16 %v56_v19, %v52_v18  ;;  %2404 = vmatprep.subr.bf16.mxu0 %v2403_v16  ;;  %v2445_v25 = vpack.c.bf16 %v58_v22, %v54_v20  ;;  %v2407_v26 = vpack.c.bf16 %v65_v24, %v61_v23  ;;  %v63_v27 = vld [vmem:[%s3900_s1 + $0x98] sm:$0xff]  ;;  %v60_v29 = vld [vmem:[%s3900_s1 + $0x80] sm:$0xff]  ;;  %v62_v32 = vld [vmem:[%s3900_s1 + $0x90] sm:$0xff] }
   0x8   :  { %2444 = vmatprep.subr.bf16.mxu1 %v2443_v17  ;;  %v67_v28 = vld [vmem:[%s3900_s1 + $0xb8] sm:$0xff]  ;;  %v64_v31 = vld [vmem:[%s3900_s1 + $0xa0] sm:$0xff]  ;;  %v66_v33 = vld [vmem:[%s3900_s1 + $0xb0] sm:$0xff] }
   0x9   :  { %v2447_v30 = vpack.c.bf16 %v67_v28, %v63_v27  ;;  %v2409_v34 = vpack.c.bf16 %v64_v31, %v60_v29  ;;  %v69_v35 = vld [vmem:[%s3900_s1 + $0xc8] sm:$0xff]  ;;  %v71_v37 = vld [vmem:[%s3900_s1 + $0xd8] sm:$0xff]  ;;  %v2449_v38 = vpack.c.bf16 %v66_v33, %v62_v32  ;;  %v68_v41 = vld [vmem:[%s3900_s1 + $0xc0] sm:$0xff] }
   0xa   :  { %2406 = vmatpush1.bf16.msra.mxu0 %v2405_v21  ;;  %v73_v36 = vld [vmem:[%s3900_s1 + $0xe8] sm:$0xff]  ;;  %v75_v40 = vld [vmem:[%s3900_s1 + $0xf8] sm:$0xff]  ;;  %v72_v42 = vld [vmem:[%s3900_s1 + $0xe0] sm:$0xff] }
   0xb   :  { %2446 = vmatpush1.bf16.msra.mxu1 %v2445_v25  ;;  %2408 = vmatprep.subr.bf16.mxu0 %v2407_v26  ;;  %v2411_v39 = vpack.c.bf16 %v73_v36, %v69_v35  ;;  %v2451_v43 = vpack.c.bf16 %v75_v40, %v71_v37  ;;  %v70_v44 = vld [vmem:[%s3900_s1 + $0xd0] sm:$0xff]  ;;  %v77_v46 = vld [vmem:[%s3900_s1 + $0x108] sm:$0xff]  ;;  %v79_v48 = vld [vmem:[%s3900_s1 + $0x118] sm:$0xff]  ;;  %v2413_v50 = vpack.c.bf16 %v72_v42, %v68_v41 }
   0xc   :  { %2448 = vmatprep.subr.bf16.mxu1 %v2447_v30  ;;  %v74_v45 = vld [vmem:[%s3900_s1 + $0xf0] sm:$0xff]  ;;  %v81_v47 = vld [vmem:[%s3900_s1 + $0x128] sm:$0xff]  ;;  %v83_v49 = vld [vmem:[%s3900_s1 + $0x138] sm:$0xff] }
   0xd   :  { %v2453_v51 = vpack.c.bf16 %v74_v45, %v70_v44  ;;  %v2415_v52 = vpack.c.bf16 %v81_v47, %v77_v46  ;;  %v76_v53 = vld [vmem:[%s3900_s1 + $0x100] sm:$0xff]  ;;  %v78_v55 = vld [vmem:[%s3900_s1 + $0x110] sm:$0xff]  ;;  %v2455_v56 = vpack.c.bf16 %v83_v49, %v79_v48  ;;  %v85_v58 = vld [vmem:[%s3900_s1 + $0x148] sm:$0xff] }
   0xe   :  { %2410 = vmatpush1.bf16.msra.mxu0 %v2409_v34  ;;  %v80_v54 = vld [vmem:[%s3900_s1 + $0x120] sm:$0xff]  ;;  %v82_v57 = vld [vmem:[%s3900_s1 + $0x130] sm:$0xff]  ;;  %v89_v59 = vld [vmem:[%s3900_s1 + $0x168] sm:$0xff] }
   0xf   :  { %2450 = vmatpush1.bf16.msra.mxu1 %v2449_v38  ;;  %2412 = vmatprep.subr.bf16.mxu0 %v2411_v39  ;;  %v87_v60 = vld [vmem:[%s3900_s1 + $0x158] sm:$0xff]  ;;  %v2417_v62 = vpack.c.bf16 %v80_v54, %v76_v53  ;;  %v2457_v63 = vpack.c.bf16 %v82_v57, %v78_v55  ;;  %v2419_v0 = vpack.c.bf16 %v89_v59, %v85_v58  ;;  %v84_v1 = vld [vmem:[%s3900_s1 + $0x140] sm:$0xff]  ;;  %v86_v3 = vld [vmem:[%s3900_s1 + $0x150] sm:$0xff] }
  0x10   :  { %2452 = vmatprep.subr.bf16.mxu1 %v2451_v43  ;;  %v91_v61 = vld [vmem:[%s3900_s1 + $0x178] sm:$0xff]  ;;  %v88_v2 = vld [vmem:[%s3900_s1 + $0x160] sm:$0xff]  ;;  %v90_v5 = vld [vmem:[%s3900_s1 + $0x170] sm:$0xff] }
  0x11   :  { %v2459_v4 = vpack.c.bf16 %v91_v61, %v87_v60  ;;  %v93_v6 = vld [vmem:[%s3900_s1 + $0x188] sm:$0xff]  ;;  %v95_v8 = vld [vmem:[%s3900_s1 + $0x198] sm:$0xff]  ;;  %v2421_v10 = vpack.c.bf16 %v88_v2, %v84_v1  ;;  %v2461_v11 = vpack.c.bf16 %v90_v5, %v86_v3  ;;  %v92_v13 = vld [vmem:[%s3900_s1 + $0x180] sm:$0xff] }
  0x12   :  { %2414 = vmatpush1.bf16.msra.mxu0 %v2413_v50  ;;  %v97_v7 = vld [vmem:[%s3900_s1 + $0x1a8] sm:$0xff]  ;;  %v99_v9 = vld [vmem:[%s3900_s1 + $0x1b8] sm:$0xff]  ;;  %v96_v14 = vld [vmem:[%s3900_s1 + $0x1a0] sm:$0xff] }
  0x13   :  { %2454 = vmatpush1.bf16.msra.mxu1 %v2453_v51  ;;  %2416 = vmatprep.subr.bf16.mxu0 %v2415_v52  ;;  %v2423_v12 = vpack.c.bf16 %v97_v7, %v93_v6  ;;  %v94_v15 = vld [vmem:[%s3900_s1 + $0x190] sm:$0xff]  ;;  %v2463_v16 = vpack.c.bf16 %v99_v9, %v95_v8  ;;  %v101_v18 = vld [vmem:[%s3900_s1 + $0x1c8] sm:$0xff]  ;;  %v103_v20 = vld [vmem:[%s3900_s1 + $0x1d8] sm:$0xff]  ;;  %v2425_v22 = vpack.c.bf16 %v96_v14, %v92_v13 }
  0x14   :  { %2456 = vmatprep.subr.bf16.mxu1 %v2455_v56  ;;  %v98_v17 = vld [vmem:[%s3900_s1 + $0x1b0] sm:$0xff]  ;;  %v105_v19 = vld [vmem:[%s3900_s1 + $0x1e8] sm:$0xff]  ;;  %v107_v21 = vld [vmem:[%s3900_s1 + $0x1f8] sm:$0xff] }
  0x15   :  { %v2465_v23 = vpack.c.bf16 %v98_v17, %v94_v15  ;;  %v2427_v24 = vpack.c.bf16 %v105_v19, %v101_v18  ;;  %v100_v25 = vld [vmem:[%s3900_s1 + $0x1c0] sm:$0xff]  ;;  %v102_v27 = vld [vmem:[%s3900_s1 + $0x1d0] sm:$0xff]  ;;  %v2467_v28 = vpack.c.bf16 %v107_v21, %v103_v20  ;;  %v109_v30 = vld [vmem:[%s3900_s1 + $0x208] sm:$0xff] }
  0x16   :  { %2418 = vmatpush1.bf16.msra.mxu0 %v2417_v62  ;;  %v104_v26 = vld [vmem:[%s3900_s1 + $0x1e0] sm:$0xff]  ;;  %v106_v29 = vld [vmem:[%s3900_s1 + $0x1f0] sm:$0xff]  ;;  %v113_v31 = vld [vmem:[%s3900_s1 + $0x228] sm:$0xff] }
  0x17   :  { %2458 = vmatpush1.bf16.msra.mxu1 %v2457_v63  ;;  %2420 = vmatprep.subr.bf16.mxu0 %v2419_v0  ;;  %v111_v32 = vld [vmem:[%s3900_s1 + $0x218] sm:$0xff]  ;;  %v21_v34 = vld [vmem:[%s3901_s0 + $0x8] sm:$0xff]  ;;  %v2429_v35 = vpack.c.bf16 %v104_v26, %v100_v25  ;;  %v2469_v36 = vpack.c.bf16 %v106_v29, %v102_v27  ;;  %v2431_v37 = vpack.c.bf16 %v113_v31, %v109_v30  ;;  %v108_v38 = vld [vmem:[%s3900_s1 + $0x200] sm:$0xff] }
  0x18   :  { %2460 = vmatprep.subr.bf16.mxu1 %v2459_v4  ;;  %v115_v33 = vld [vmem:[%s3900_s1 + $0x238] sm:$0xff]  ;;  %1573 = vmatprep.mubr.msk.f32.mxu0 %vm128_vm0, %v21_v34  ;;  %v112_v39 = vld [vmem:[%s3900_s1 + $0x220] sm:$0xff]  ;;  %v110_v40 = vld [vmem:[%s3900_s1 + $0x210] sm:$0xff] }
  0x19   :  { %v2471_v41 = vpack.c.bf16 %v115_v33, %v111_v32  ;;  %v114_v42 = vld [vmem:[%s3900_s1 + $0x230] sm:$0xff]  ;;  %v117_v43 = vld [vmem:[%s3900_s1 + $0x248] sm:$0xff]  ;;  %1585 = vmatprep.mubr.msk.f32.mxu1 %vm128_vm0, %v21_v34  ;;  %v119_v45 = vld [vmem:[%s3900_s1 + $0x258] sm:$0xff]  ;;  %v2433_v47 = vpack.c.bf16 %v112_v39, %v108_v38 }
  0x1a   :  { %2422 = vmatpush1.bf16.msra.mxu0 %v2421_v10  ;;  %v121_v44 = vld [vmem:[%s3900_s1 + $0x268] sm:$0xff]  ;;  %v123_v46 = vld [vmem:[%s3900_s1 + $0x278] sm:$0xff]  ;;  %v2473_v48 = vpack.c.bf16 %v114_v42, %v110_v40  ;;  %v116_v50 = vld [vmem:[%s3900_s1 + $0x240] sm:$0xff] }
  0x1b   :  { %2462 = vmatpush1.bf16.msra.mxu1 %v2461_v11  ;;  %2424 = vmatprep.subr.bf16.mxu0 %v2423_v12  ;;  %v2435_v49 = vpack.c.bf16 %v121_v44, %v117_v43  ;;  %v120_v51 = vld [vmem:[%s3900_s1 + $0x260] sm:$0xff]  ;;  %v2475_v52 = vpack.c.bf16 %v123_v46, %v119_v45  ;;  %v118_v53 = vld [vmem:[%s3900_s1 + $0x250] sm:$0xff]  ;;  %v125_v57 = vld [vmem:[%s3900_s1 + $0x288] sm:$0xff]  ;;  %v2770_v11 = vmov 0.0|0.0  }
  0x1c   :  { %2464 = vmatprep.subr.bf16.mxu1 %v2463_v16  ;;  %v122_v54 = vld [vmem:[%s3900_s1 + $0x270] sm:$0xff]  ;;  %v2437_v55 = vpack.c.bf16 %v120_v51, %v116_v50  ;;  %v127_v58 = vld [vmem:[%s3900_s1 + $0x298] sm:$0xff]  ;;  %v124_v59 = vld [vmem:[%s3900_s1 + $0x280] sm:$0xff] }
  0x1d   :  { %v2477_v56 = vpack.c.bf16 %v122_v54, %v118_v53  ;;  %v126_v60 = vld [vmem:[%s3900_s1 + $0x290] sm:$0xff]  ;;  %v1598_v61 = vld [vmem:[%s3902_s3 + $0x80] sm:$0xff]  ;;  %v1599_v62 = vld [vmem:[%s3902_s3 + $0x88] sm:$0xff] }
  0x1e   :  { %2426 = vmatpush1.bf16.msra.mxu0 %v2425_v22  ;;  %v20_v63 = vld [vmem:[%s3901_s0] sm:$0xff]  ;;  %v507_v1 = vld [vmem:[%s3902_s3 + $0x8] sm:$0xff]  ;;  %v23_v2 = vld [vmem:[%s3901_s0 + $0x18] sm:$0xff]  ;;  %v2480_v3 = vpack.c.bf16 %v1599_v62, %v1598_v61 }
  0x1f   :  { %2466 = vmatpush1.bf16.msra.mxu1 %v2465_v23  ;;  %2428 = vmatprep.subr.bf16.mxu0 %v2427_v24  ;;  %v506_v0 = vld [vmem:[%s3902_s3] sm:$0xff]  ;;  %v1600_v5 = vld [vmem:[%s3902_s3 + $0x90] sm:$0xff]  ;;  %v1601_v6 = vld [vmem:[%s3902_s3 + $0x98] sm:$0xff] }
  0x20   :  { %2468 = vmatprep.subr.bf16.mxu1 %v2467_v28  ;;  %v2504_v4 = vpack.c.bf16 %v507_v1, %v506_v0  ;;  %v22_v7 = vld [vmem:[%s3901_s0 + $0x10] sm:$0xff]  ;;  %v509_v9 = vld [vmem:[%s3902_s3 + $0x18] sm:$0xff]  ;;  %v25_v10 = vld [vmem:[%s3901_s0 + $0x28] sm:$0xff]  ;;  %v2483_v12 = vpack.c.bf16 %v1601_v6, %v1600_v5  ;;  %v2772_v5 = vmov 0.0  }
  0x21   :  { %v508_v8 = vld [vmem:[%s3902_s3 + $0x10] sm:$0xff]  ;;  %v1602_v14 = vld [vmem:[%s3902_s3 + $0xa0] sm:$0xff]  ;;  %v1603_v15 = vld [vmem:[%s3902_s3 + $0xa8] sm:$0xff] }
  0x22   :  { %2430 = vmatpush1.bf16.msra.mxu0 %v2429_v35  ;;  %v2507_v13 = vpack.c.bf16 %v509_v9, %v508_v8  ;;  %v24_v16 = vld [vmem:[%s3901_s0 + $0x20] sm:$0xff]  ;;  %v511_v18 = vld [vmem:[%s3902_s3 + $0x28] sm:$0xff]  ;;  %v27_v19 = vld [vmem:[%s3901_s0 + $0x38] sm:$0xff]  ;;  %v2486_v20 = vpack.c.bf16 %v1603_v15, %v1602_v14 }
  0x23   :  { %2470 = vmatpush1.bf16.msra.mxu1 %v2469_v36  ;;  %2432 = vmatprep.subr.bf16.mxu0 %v2431_v37  ;;  %v510_v17 = vld [vmem:[%s3902_s3 + $0x20] sm:$0xff]  ;;  %v1604_v22 = vld [vmem:[%s3902_s3 + $0xb0] sm:$0xff]  ;;  %v1605_v23 = vld [vmem:[%s3902_s3 + $0xb8] sm:$0xff] }
  0x24   :  { %2472 = vmatprep.subr.bf16.mxu1 %v2471_v41  ;;  %v2510_v21 = vpack.c.bf16 %v511_v18, %v510_v17  ;;  %v26_v24 = vld [vmem:[%s3901_s0 + $0x30] sm:$0xff]  ;;  %v513_v26 = vld [vmem:[%s3902_s3 + $0x38] sm:$0xff]  ;;  %v29_v27 = vld [vmem:[%s3901_s0 + $0x48] sm:$0xff]  ;;  %v2489_v28 = vpack.c.bf16 %v1605_v23, %v1604_v22 }
  0x25   :  { %v512_v25 = vld [vmem:[%s3902_s3 + $0x30] sm:$0xff]  ;;  %v1606_v30 = vld [vmem:[%s3902_s3 + $0xc0] sm:$0xff]  ;;  %v1607_v31 = vld [vmem:[%s3902_s3 + $0xc8] sm:$0xff] }
  0x26   :  { %2434 = vmatpush1.bf16.msra.mxu0 %v2433_v47  ;;  %v2513_v29 = vpack.c.bf16 %v513_v26, %v512_v25  ;;  %v28_v32 = vld [vmem:[%s3901_s0 + $0x40] sm:$0xff]  ;;  %v515_v34 = vld [vmem:[%s3902_s3 + $0x48] sm:$0xff]  ;;  %v31_v35 = vld [vmem:[%s3901_s0 + $0x58] sm:$0xff]  ;;  %v2492_v36 = vpack.c.bf16 %v1607_v31, %v1606_v30 }
  0x27   :  { %2474 = vmatpush1.bf16.msra.mxu1 %v2473_v48  ;;  %2436 = vmatprep.subr.bf16.mxu0 %v2435_v49  ;;  %v514_v33 = vld [vmem:[%s3902_s3 + $0x40] sm:$0xff]  ;;  %v1608_v38 = vld [vmem:[%s3902_s3 + $0xd0] sm:$0xff]  ;;  %v1609_v39 = vld [vmem:[%s3902_s3 + $0xd8] sm:$0xff] }
  0x28   :  { %2476 = vmatprep.subr.bf16.mxu1 %v2475_v52  ;;  %v2516_v37 = vpack.c.bf16 %v515_v34, %v514_v33  ;;  %v30_v40 = vld [vmem:[%s3901_s0 + $0x50] sm:$0xff]  ;;  %v517_v42 = vld [vmem:[%s3902_s3 + $0x58] sm:$0xff]  ;;  %v33_v43 = vld [vmem:[%s3901_s0 + $0x68] sm:$0xff]  ;;  %v2495_v44 = vpack.c.bf16 %v1609_v39, %v1608_v38 }
  0x29   :  { %v516_v41 = vld [vmem:[%s3902_s3 + $0x50] sm:$0xff]  ;;  %v32_v46 = vld [vmem:[%s3901_s0 + $0x60] sm:$0xff]  ;;  %v35_v47 = vld [vmem:[%s3901_s0 + $0x78] sm:$0xff] }
  0x2a   :  { %2438 = vmatpush1.bf16.msra.mxu0 %v2437_v55  ;;  %v2519_v45 = vpack.c.bf16 %v517_v42, %v516_v41  ;;  %v34_v48 = vld [vmem:[%s3901_s0 + $0x70] sm:$0xff]  ;;  %v37_v49 = vld [vmem:[%s3901_s0 + $0x88] sm:$0xff]  ;;  %v36_v50 = vld [vmem:[%s3901_s0 + $0x80] sm:$0xff] }
  0x2b   :  { %2478 = vmatpush1.bf16.msra.mxu1 %v2477_v56  ;;  %205 = vmatprep.subr.mxu0 %v125_v57  ;;  %v39_v51 = vld [vmem:[%s3901_s0 + $0x98] sm:$0xff]  ;;  %v38_v52 = vld [vmem:[%s3901_s0 + $0x90] sm:$0xff]  ;;  %v41_v53 = vld [vmem:[%s3901_s0 + $0xa8] sm:$0xff] }
  0x2c   :  { %342 = vmatprep.subr.mxu1 %v127_v58  ;;  %v40_v54 = vld [vmem:[%s3901_s0 + $0xa0] sm:$0xff]  ;;  %v43_v55 = vld [vmem:[%s3901_s0 + $0xb8] sm:$0xff]  ;;  %v42_v56 = vld [vmem:[%s3901_s0 + $0xb0] sm:$0xff] }
  0x2d   :  { %v518_v57 = vld [vmem:[%s3902_s3 + $0x60] sm:$0xff]  ;;  %v519_v58 = vld [vmem:[%s3902_s3 + $0x68] sm:$0xff]  ;;  %v521_v0 = vld [vmem:[%s3902_s3 + $0x78] sm:$0xff] }
  0x2e   :  { %206 = vmatpush1.msra.mxu0 %v124_v59  ;;  %v2522_v59 = vpack.c.bf16 %v519_v58, %v518_v57  ;;  %v1611_v61 = vld [vmem:[%s3902_s3 + $0xe8] sm:$0xff]  ;;  %v1630_v18 = vld [vmem:[%s3902_s3 + $0x180] sm:$0xff]  ;;  %v1632_v30 = vld [vmem:[%s3902_s3 + $0x190] sm:$0xff] }
  0x2f   :  { %343 = vmatpush1.msra.mxu1 %v126_v60  ;;  %230 = vmatmul.mubr.f32.vlgmr.msra.gmra.mrb[0].mxu0 %v20_v63  ;;  %v1610_v60 = vld [vmem:[%s3902_s3 + $0xe0] sm:$0xff]  ;;  %v1633_v31 = vld [vmem:[%s3902_s3 + $0x198] sm:$0xff]  ;;  %v1616_v39 = vld [vmem:[%s3902_s3 + $0x110] sm:$0xff] }
  0x30   :  { %367 = vmatmul.mubr.f32.vlgmr.msra.gmra.mrb[0].mxu1 %v20_v63  ;;  %1574 = vmatprep.mubr.msk.f32.mxu0 %vm128_vm0, %v23_v2  ;;  %v2498_v62 = vpack.c.bf16 %v1611_v61, %v1610_v60  ;;  %v520_v63 = vld [vmem:[%s3902_s3 + $0x70] sm:$0xff]  ;;  %v1637_v58 = vld [vmem:[%s3902_s3 + $0x1b8] sm:$0xff] }
  0x31   :  { %1586 = vmatprep.mubr.msk.f32.mxu1 %vm128_vm0, %v23_v2  ;;  %2479 = vmatprep.subr.bf16.mxu0 %v2770_v11  ;;  %v2525_v1 = vpack.c.bf16 %v521_v0, %v520_v63  ;;  %v1612_v2 = vld [vmem:[%s3902_s3 + $0xf0] sm:$0xff] }
  0x32   :  { %2481 = vmatpush3.bf16.msra.mxu0 %v2480_v3  ;;  %2503 = vmatprep.subr.bf16.mxu1 %v2770_v11  ;;  %v1613_v3 = vld [vmem:[%s3902_s3 + $0xf8] sm:$0xff]  ;;  %v1636_v57 = vld [vmem:[%s3902_s3 + $0x1b0] sm:$0xff] }
  0x33   :  { %236 = vmatmul.mubr.f32.gmra.mrb[2].mxu0 %v22_v7  ;;  %2505 = vmatpush3.bf16.msra.mxu1 %v2504_v4  ;;  %v2501_v4 = vpack.c.bf16 %v1613_v3, %v1612_v2  ;;  %v1620_v2 = vld [vmem:[%s3902_s3 + $0x130] sm:$0xff]  ;;  %v2561_v3 = vpack.c.bf16 %v1637_v58, %v1636_v57 }
  0x34   :  { %373 = vmatmul.mubr.f32.gmra.mrb[2].mxu1 %v22_v7  ;;  %1575 = vmatprep.mubr.msk.f32.mxu0 %vm128_vm0, %v25_v10 }
  0x35   :  { %1587 = vmatprep.mubr.msk.f32.mxu1 %vm128_vm0, %v25_v10  ;;  %2482 = vmatprep.subr.bf16.mxu0 %v2770_v11 }
  0x36   :  { %2484 = vmatpush3.bf16.msra.mxu0 %v2483_v12  ;;  %2506 = vmatprep.subr.bf16.mxu1 %v2770_v11 }
  0x37   :  { %242 = vmatmul.mubr.f32.gmra.mrb[4].mxu0 %v24_v16  ;;  %2508 = vmatpush3.bf16.msra.mxu1 %v2507_v13  ;;  %v3272_v13 = vld [vmem:[%s3903_s2] ss:$0 sm:$0xff] }
  0x38   :  { %379 = vmatmul.mubr.f32.gmra.mrb[4].mxu1 %v24_v16  ;;  %1576 = vmatprep.mubr.msk.f32.mxu0 %vm128_vm0, %v27_v19 }
  0x39   :  { %1588 = vmatprep.mubr.msk.f32.mxu1 %vm128_vm0, %v27_v19  ;;  %2485 = vmatprep.subr.bf16.mxu0 %v2770_v11  ;;  %v1631_v19 = vld [vmem:[%s3902_s3 + $0x188] sm:$0xff] }
  0x3a   :  { %2487 = vmatpush3.bf16.msra.mxu0 %v2486_v20  ;;  %2509 = vmatprep.subr.bf16.mxu1 %v2770_v11  ;;  %v2552_v25 = vpack.c.bf16 %v1631_v19, %v1630_v18  ;;  %v1622_v19 = vld [vmem:[%s3902_s3 + $0x140] sm:$0xff] }
  0x3b   :  { %248 = vmatmul.mubr.f32.gmra.mrb[6].mxu0 %v26_v24  ;;  %2511 = vmatpush3.bf16.msra.mxu1 %v2510_v21 }
  0x3c   :  { %385 = vmatmul.mubr.f32.gmra.mrb[6].mxu1 %v26_v24  ;;  %1577 = vmatprep.mubr.msk.f32.mxu0 %vm128_vm0, %v29_v27  ;;  %v1614_v24 = vld [vmem:[%s3902_s3 + $0x100] sm:$0xff] }
  0x3d   :  { %1589 = vmatprep.mubr.msk.f32.mxu1 %vm128_vm0, %v29_v27  ;;  %2488 = vmatprep.subr.bf16.mxu0 %v2770_v11 }
  0x3e   :  { %2490 = vmatpush3.bf16.msra.mxu0 %v2489_v28  ;;  %2512 = vmatprep.subr.bf16.mxu1 %v2770_v11 }
  0x3f   :  { %254 = vmatmul.mubr.f32.gmra.mrb[8].mxu0 %v28_v32  ;;  %2514 = vmatpush3.bf16.msra.mxu1 %v2513_v29  ;;  %v1615_v29 = vld [vmem:[%s3902_s3 + $0x108] sm:$0xff] }
  0x40   :  { %391 = vmatmul.mubr.f32.gmra.mrb[8].mxu1 %v28_v32  ;;  %1578 = vmatprep.mubr.msk.f32.mxu0 %vm128_vm0, %v31_v35  ;;  %v2528_v38 = vpack.c.bf16 %v1615_v29, %v1614_v24  ;;  %v1641_v24 = vld [vmem:[%s3902_s3 + $0x1d8] sm:$0xff] }
  0x41   :  { %1590 = vmatprep.mubr.msk.f32.mxu1 %vm128_vm0, %v31_v35  ;;  %2491 = vmatprep.subr.bf16.mxu0 %v2770_v11 }
  0x42   :  { %2493 = vmatpush3.bf16.msra.mxu0 %v2492_v36  ;;  %2515 = vmatprep.subr.bf16.mxu1 %v2770_v11 }
  0x43   :  { %260 = vmatmul.mubr.f32.gmra.mrb[10].mxu0 %v30_v40  ;;  %2517 = vmatpush3.bf16.msra.mxu1 %v2516_v37 }
  0x44   :  { %397 = vmatmul.mubr.f32.gmra.mrb[10].mxu1 %v30_v40  ;;  %1579 = vmatprep.mubr.msk.f32.mxu0 %vm128_vm0, %v33_v43  ;;  %v2555_v40 = vpack.c.bf16 %v1633_v31, %v1632_v30 }
  0x45   :  { %1591 = vmatprep.mubr.msk.f32.mxu1 %vm128_vm0, %v33_v43  ;;  %2494 = vmatprep.subr.bf16.mxu0 %v2770_v11  ;;  %v1617_v43 = vld [vmem:[%s3902_s3 + $0x118] sm:$0xff] }
  0x46   :  { %2496 = vmatpush3.bf16.msra.mxu0 %v2495_v44  ;;  %2518 = vmatprep.subr.bf16.mxu1 %v2770_v11  ;;  %v1634_v44 = vld [vmem:[%s3902_s3 + $0x1a0] sm:$0xff] }
  0x47   :  { %266 = vmatmul.mubr.f32.gmra.mrb[12].mxu0 %v32_v46  ;;  %2520 = vmatpush3.bf16.msra.mxu1 %v2519_v45  ;;  %v1635_v45 = vld [vmem:[%s3902_s3 + $0x1a8] sm:$0xff] }
  0x48   :  { %403 = vmatmul.mubr.f32.gmra.mrb[12].mxu1 %v32_v46  ;;  %1580 = vmatprep.mubr.msk.f32.mxu0 %vm128_vm0, %v35_v47 }
  0x49   :  { %1592 = vmatprep.mubr.msk.f32.mxu1 %vm128_vm0, %v35_v47  ;;  %2497 = vmatprep.subr.bf16.mxu0 %v2770_v11 }
  0x4a   :  { %2521 = vmatprep.subr.bf16.mxu1 %v2770_v11  ;;  %2499 = vmatpush3.bf16.msra.mxu0 %v2498_v62 }
  0x4b   :  { %272 = vmatmul.mubr.f32.gmra.mrb[14].mxu0 %v34_v48  ;;  %2523 = vmatpush3.bf16.msra.mxu1 %v2522_v59 }
  0x4c   :  { %409 = vmatmul.mubr.f32.gmra.mrb[14].mxu1 %v34_v48  ;;  %1581 = vmatprep.mubr.msk.f32.mxu0 %vm128_vm0, %v37_v49 }
  0x4d   :  { %1593 = vmatprep.mubr.msk.f32.mxu1 %vm128_vm0, %v37_v49  ;;  %2524 = vmatprep.subr.bf16.mxu1 %v2770_v11 }
  0x4e   :  { %2500 = vmatprep.subr.bf16.mxu0 %v2770_v11 }
  0x4f   :  { %278 = vmatmul.mubr.f32.gmra.mrb[16].mxu0 %v36_v50  ;;  %2526 = vmatpush3.bf16.msra.mxu1 %v2525_v1 }
  0x50   :  { %415 = vmatmul.mubr.f32.gmra.mrb[16].mxu1 %v36_v50  ;;  %1582 = vmatprep.mubr.msk.f32.mxu0 %vm128_vm0, %v39_v51 }
  0x51   :  { %1594 = vmatprep.mubr.msk.f32.mxu1 %vm128_vm0, %v39_v51  ;;  %2551 = vmatprep.subr.bf16.mxu1 %v2770_v11 }
  0x52   :  { %2502 = vmatpush3.bf16.msra.mxu0 %v2501_v4 }
  0x53   :  { %284 = vmatmul.mubr.f32.gmra.mrb[18].mxu0 %v38_v52  ;;  %2527 = vmatprep.subr.bf16.mxu0 %v2770_v11 }
  0x54   :  { %421 = vmatmul.mubr.f32.gmra.mrb[18].mxu1 %v38_v52  ;;  %1583 = vmatprep.mubr.msk.f32.mxu0 %vm128_vm0, %v41_v53  ;;  %v2531_v52 = vpack.c.bf16 %v1617_v43, %v1616_v39 }
  0x55   :  { %1595 = vmatprep.mubr.msk.f32.mxu1 %vm128_vm0, %v41_v53  ;;  %v1618_v53 = vld [vmem:[%s3902_s3 + $0x120] sm:$0xff] }
  0x57   :  { %290 = vmatmul.mubr.f32.gmra.mrb[20].mxu0 %v40_v54 }
  0x58   :  { %427 = vmatmul.mubr.f32.gmra.mrb[20].mxu1 %v40_v54  ;;  %1584 = vmatprep.mubr.msk.f32.mxu0 %vm128_vm0, %v43_v55  ;;  %v2558_v54 = vpack.c.bf16 %v1635_v45, %v1634_v44 }
  0x59   :  { %1596 = vmatprep.mubr.msk.f32.mxu1 %vm128_vm0, %v43_v55 }
  0x5b   :  { %296 = vmatmul.mubr.f32.gmra.mrb[22].mxu0 %v42_v56 }
  0x5c   :  { %433 = vmatmul.mubr.f32.gmra.mrb[22].mxu1 %v42_v56  ;;  %2011 = vmatprep.mubr.msk.f32.mxu0 %vm2771_vm1, %v2772_v5  ;;  %v1619_v56 = vld [vmem:[%s3902_s3 + $0x128] sm:$0xff] }
  0x5d   :  { %2046 = vmatprep.mubr.msk.f32.mxu1 %vm2771_vm1, %v2772_v5  ;;  %v2534_v1 = vpack.c.bf16 %v1619_v56, %v1618_v53  ;;  %v1645_v53 = vld [vmem:[%s3902_s3 + $0x1f8] sm:$0xff] }
 0x102   :  { %v231_v6 = vpop.f32.mrb[0].mxu0 }
 0x103   :  { %v368_v7 = vpop.f32.mrb[0].mxu1  ;;  %v233_v8 = vpop.f32.mrb[1].mxu0 }
 0x104   :  { %v439_v9 = vmax.f32 %v231_v6, %v233_v8  ;;  %v370_v10 = vpop.f32.mrb[1].mxu1  ;;  %v1621_v6 = vld [vmem:[%s3902_s3 + $0x138] sm:$0xff]  ;;  %v1639_v8 = vld [vmem:[%s3902_s3 + $0x1c8] sm:$0xff] }
 0x105   :  { %v451_v12 = vmax.f32 %v368_v7, %v370_v10  ;;  %v1638_v7 = vld [vmem:[%s3902_s3 + $0x1c0] sm:$0xff]  ;;  %v2537_v18 = vpack.c.bf16 %v1621_v6, %v1620_v2 }
 0x106   :  { %v237_v14 = vpop.f32.mrb[2].mxu0 }
 0x107   :  { %v463_v15 = vmax.f32 %v439_v9, %v451_v12  ;;  %v374_v16 = vpop.f32.mrb[2].mxu1  ;;  %v239_v17 = vpop.f32.mrb[3].mxu0 }
 0x108   :  { %v440_v20 = vmax.f32 %v237_v14, %v239_v17  ;;  %v376_v21 = vpop.f32.mrb[3].mxu1 }
 0x109   :  { %v482_v22 = vadd.f32 %v3272_v13, %v463_v15  ;;  %v452_v23 = vmax.f32 %v374_v16, %v376_v21 }
 0x10a   :  { %v243_v26 = vpop.f32.mrb[4].mxu0 }
 0x10b   :  { %v494_v27 = vmax.f32 %v482_v22, 0.0  ;;  %v464_v28 = vmax.f32 %v440_v20, %v452_v23  ;;  %v380_v32 = vpop.f32.mrb[4].mxu1  ;;  %v245_v33 = vpop.f32.mrb[5].mxu0  ;;  %v2564_v20 = vpack.c.bf16 %v1639_v8, %v1638_v7  ;;  %v1623_v22 = vld [vmem:[%s3902_s3 + $0x148] sm:$0xff]  ;;  %v1640_v23 = vld [vmem:[%s3902_s3 + $0x1d0] sm:$0xff] }
 0x10c   :  { %v441_v34 = vmax.f32 %v243_v26, %v245_v33  ;;  %v382_v35 = vpop.f32.mrb[5].mxu1  ;;  %v1624_v33 = vld [vmem:[%s3902_s3 + $0x150] sm:$0xff] }
 0x10d   :  { %v483_v36 = vadd.f32 %v3272_v13, %v464_v28  ;;  %2047 = vmatmul.mubr.f32.vlgmr.msra.gmra.mrb[24].mxu1 %v494_v27  ;;  %v453_v37 = vmax.f32 %v380_v32, %v382_v35  ;;  %v2540_v32 = vpack.c.bf16 %v1623_v22, %v1622_v19  ;;  %v1647_v22 = vld [vmem:[%s3902_s3 + $0x208] sm:$0xff] }
 0x10e   :  { %2553 = vmatpush3.bf16.msra.mxu1 %v2552_v25  ;;  %v249_v41 = vpop.f32.mrb[6].mxu0  ;;  %2116 = vmatprep.mubr.msk.f32.mxu1 %vm2771_vm1, %v2772_v5 }
 0x10f   :  { %v495_v42 = vmax.f32 %v483_v36, 0.0  ;;  %2554 = vmatprep.subr.bf16.mxu1 %v2770_v11  ;;  %v3309_v46 = vmax.f32 %v441_v34, %v453_v37  ;;  %v386_v47 = vpop.f32.mrb[6].mxu1  ;;  %v251_v48 = vpop.f32.mrb[7].mxu0  ;;  %v2567_v34 = vpack.c.bf16 %v1641_v24, %v1640_v23  ;;  %v1625_v36 = vld [vmem:[%s3902_s3 + $0x158] sm:$0xff]  ;;  %v1642_v37 = vld [vmem:[%s3902_s3 + $0x1e0] sm:$0xff]  ;;  %v1664_v23 = vld [vmem:[%s3902_s3 + $0x290] sm:$0xff] }
 0x110   :  { %v442_v49 = vmax.f32 %v249_v41, %v251_v48  ;;  %v388_v50 = vpop.f32.mrb[7].mxu1  ;;  %v1626_v48 = vld [vmem:[%s3902_s3 + $0x160] sm:$0xff]  ;;  %v1665_v24 = vld [vmem:[%s3902_s3 + $0x298] sm:$0xff] }
 0x111   :  { %2012 = vmatmul.mubr.f32.vlgmr.msra.gmra.mrb[24].mxu0 %v495_v42  ;;  %v454_v51 = vmax.f32 %v386_v47, %v388_v50  ;;  %v2543_v47 = vpack.c.bf16 %v1625_v36, %v1624_v33  ;;  %v1648_v33 = vld [vmem:[%s3902_s3 + $0x210] sm:$0xff] }
 0x112   :  { %2529 = vmatpush3.bf16.msra.mxu0 %v2528_v38  ;;  %2556 = vmatpush3.bf16.msra.mxu1 %v2555_v40  ;;  %v255_v55 = vpop.f32.mrb[8].mxu0  ;;  %v1643_v38 = vld [vmem:[%s3902_s3 + $0x1e8] sm:$0xff] }
 0x113   :  { %2530 = vmatprep.subr.bf16.mxu0 %v2770_v11  ;;  %2557 = vmatprep.subr.bf16.mxu1 %v2770_v11  ;;  %v3325_v59 = vmax.f32 %v442_v49, %v454_v51  ;;  %v392_v60 = vpop.f32.mrb[8].mxu1  ;;  %v257_v61 = vpop.f32.mrb[9].mxu0  ;;  %v2570_v49 = vpack.c.bf16 %v1643_v38, %v1642_v37  ;;  %v1627_v51 = vld [vmem:[%s3902_s3 + $0x168] sm:$0xff]  ;;  %v1649_v37 = vld [vmem:[%s3902_s3 + $0x218] sm:$0xff]  ;;  %v1666_v38 = vld [vmem:[%s3902_s3 + $0x2a0] sm:$0xff] }
 0x114   :  { %2081 = vmatprep.mubr.msk.f32.mxu0 %vm2771_vm1, %v2772_v5  ;;  %v443_v62 = vmax.f32 %v255_v55, %v257_v61  ;;  %v394_v63 = vpop.f32.mrb[9].mxu1 }
 0x115   :  { %v455_v0 = vmax.f32 %v392_v60, %v394_v63  ;;  %v485_v60 = vadd.f32 %v3272_v13, %v3325_v59  ;;  %v2546_v63 = vpack.c.bf16 %v1627_v51, %v1626_v48  ;;  %v1629_v59 = vld [vmem:[%s3902_s3 + $0x178] sm:$0xff] }
 0x116   :  { %2532 = vmatpush3.bf16.msra.mxu0 %v2531_v52  ;;  %2559 = vmatpush3.bf16.msra.mxu1 %v2558_v54  ;;  %v261_v4 = vpop.f32.mrb[10].mxu0  ;;  %v1644_v52 = vld [vmem:[%s3902_s3 + $0x1f0] sm:$0xff] }
 0x117   :  { %2533 = vmatprep.subr.bf16.mxu0 %v2770_v11  ;;  %2560 = vmatprep.subr.bf16.mxu1 %v2770_v11  ;;  %v467_v9 = vmax.f32 %v443_v62, %v455_v0  ;;  %v398_v10 = vpop.f32.mrb[10].mxu1  ;;  %v263_v12 = vpop.f32.mrb[11].mxu0  ;;  %v1628_v0 = vld [vmem:[%s3902_s3 + $0x170] sm:$0xff] }
 0x118   :  { %v444_v14 = vmax.f32 %v261_v4, %v263_v12  ;;  %v400_v15 = vpop.f32.mrb[11].mxu1  ;;  %v1663_v4 = vld [vmem:[%s3902_s3 + $0x288] sm:$0xff]  ;;  %v497_v12 = vmax.f32 %v485_v60, 0.0 }
 0x119   :  { %v3344_v16 = vadd.f32 %v3272_v13, %v467_v9  ;;  %v456_v17 = vmax.f32 %v398_v10, %v400_v15 }
 0x11a   :  { %2535 = vmatpush3.bf16.msra.mxu0 %v2534_v1  ;;  %2562 = vmatpush3.bf16.msra.mxu1 %v2561_v3  ;;  %v267_v21 = vpop.f32.mrb[12].mxu0  ;;  %v2573_v1 = vpack.c.bf16 %v1645_v53, %v1644_v52  ;;  %v1662_v3 = vld [vmem:[%s3902_s3 + $0x280] sm:$0xff]  ;;  %v1651_v52 = vld [vmem:[%s3902_s3 + $0x228] sm:$0xff]  ;;  %v1668_v53 = vld [vmem:[%s3902_s3 + $0x2b0] sm:$0xff] }
 0x11b   :  { %2536 = vmatprep.subr.bf16.mxu0 %v2770_v11  ;;  %2563 = vmatprep.subr.bf16.mxu1 %v2770_v11  ;;  %v468_v25 = vmax.f32 %v444_v14, %v456_v17  ;;  %v404_v26 = vpop.f32.mrb[12].mxu1  ;;  %v269_v27 = vpop.f32.mrb[13].mxu0  ;;  %v2549_v17 = vpack.c.bf16 %v1629_v59, %v1628_v0  ;;  %v2600_v19 = vpack.c.bf16 %v1663_v4, %v1662_v3  ;;  %v1655_v59 = vld [vmem:[%s3902_s3 + $0x248] sm:$0xff]  ;;  %v1672_v3 = vld [vmem:[%s3902_s3 + $0x2d0] sm:$0xff]  ;;  %v1673_v4 = vld [vmem:[%s3902_s3 + $0x2d8] sm:$0xff] }
 0x11c   :  { %v445_v28 = vmax.f32 %v267_v21, %v269_v27  ;;  %v406_v29 = vpop.f32.mrb[13].mxu1  ;;  %v484_v21 = vadd.f32 %v3272_v13, %v3309_v46 }
 0x11d   :  { %v3361_v30 = vadd.f32 %v3272_v13, %v468_v25  ;;  %v457_v31 = vmax.f32 %v404_v26, %v406_v29 }
 0x11e   :  { %2538 = vmatpush3.bf16.msra.mxu0 %v2537_v18  ;;  %2565 = vmatpush3.bf16.msra.mxu1 %v2564_v20  ;;  %v273_v35 = vpop.f32.mrb[14].mxu0  ;;  %v1646_v18 = vld [vmem:[%s3902_s3 + $0x200] sm:$0xff]  ;;  %v496_v36 = vmax.f32 %v484_v21, 0.0  ;;  %v1677_v21 = vld [vmem:[%s3902_s3 + $0x2f8] sm:$0xff] }
 0x11f   :  { %2539 = vmatprep.subr.bf16.mxu0 %v2770_v11  ;;  %2566 = vmatprep.subr.bf16.mxu1 %v2770_v11  ;;  %v469_v39 = vmax.f32 %v445_v28, %v457_v31  ;;  %v410_v40 = vpop.f32.mrb[14].mxu1  ;;  %v275_v41 = vpop.f32.mrb[15].mxu0 }
 0x120   :  { %v446_v42 = vmax.f32 %v273_v35, %v275_v41  ;;  %v412_v43 = vpop.f32.mrb[15].mxu1 }
 0x121   :  { %v3378_v44 = vadd.f32 %v3272_v13, %v469_v39  ;;  %v458_v45 = vmax.f32 %v410_v40, %v412_v43  ;;  %v1667_v39 = vld [vmem:[%s3902_s3 + $0x2a8] sm:$0xff] }
 0x122   :  { %2541 = vmatpush3.bf16.msra.mxu0 %v2540_v32  ;;  %2568 = vmatpush3.bf16.msra.mxu1 %v2567_v34  ;;  %v279_v50 = vpop.f32.mrb[16].mxu0  ;;  %v2576_v32 = vpack.c.bf16 %v1647_v22, %v1646_v18  ;;  %v2603_v34 = vpack.c.bf16 %v1665_v24, %v1664_v23  ;;  %v2606_v51 = vpack.c.bf16 %v1667_v39, %v1666_v38  ;;  %v1660_v23 = vld [vmem:[%s3902_s3 + $0x270] sm:$0xff]  ;;  %v498_v38 = vmax.f32 %v3344_v16, 0.0  ;;  %v1681_v39 = vld [vmem:[%s3902_s3 + $0x318] sm:$0xff] }
 0x123   :  { %2542 = vmatprep.subr.bf16.mxu0 %v2770_v11  ;;  %2569 = vmatprep.subr.bf16.mxu1 %v2770_v11  ;;  %v470_v54 = vmax.f32 %v446_v42, %v458_v45  ;;  %v416_v55 = vpop.f32.mrb[16].mxu1  ;;  %v281_v56 = vpop.f32.mrb[17].mxu0 }
 0x124   :  { %v447_v57 = vmax.f32 %v279_v50, %v281_v56  ;;  %v418_v58 = vpop.f32.mrb[17].mxu1  ;;  %v1650_v50 = vld [vmem:[%s3902_s3 + $0x220] sm:$0xff] }
 0x125   :  { %v3397_v61 = vadd.f32 %v3272_v13, %v470_v54  ;;  %v459_v62 = vmax.f32 %v416_v55, %v418_v58  ;;  %v1669_v54 = vld [vmem:[%s3902_s3 + $0x2b8] sm:$0xff]  ;;  %v1652_v58 = vld [vmem:[%s3902_s3 + $0x230] sm:$0xff] }
 0x126   :  { %2544 = vmatpush3.bf16.msra.mxu0 %v2543_v47  ;;  %2571 = vmatpush3.bf16.msra.mxu1 %v2570_v49  ;;  %v285_v2 = vpop.f32.mrb[18].mxu0  ;;  %v2579_v49 = vpack.c.bf16 %v1649_v37, %v1648_v33  ;;  %v2609_v60 = vpack.c.bf16 %v1669_v54, %v1668_v53  ;;  %v1679_v33 = vld [vmem:[%s3902_s3 + $0x308] sm:$0xff]  ;;  %v1685_v53 = vld [vmem:[%s3902_s3 + $0x338] sm:$0xff]  ;;  %v1702_v54 = vld [vmem:[%s3902_s3 + $0x3c0] sm:$0xff] }
 0x127   :  { %2545 = vmatprep.subr.bf16.mxu0 %v2770_v11  ;;  %2572 = vmatprep.subr.bf16.mxu1 %v2770_v11  ;;  %v471_v6 = vmax.f32 %v447_v57, %v459_v62  ;;  %v422_v7 = vpop.f32.mrb[18].mxu1  ;;  %v287_v8 = vpop.f32.mrb[19].mxu0  ;;  %v2582_v57 = vpack.c.bf16 %v1651_v52, %v1650_v50  ;;  %v1653_v62 = vld [vmem:[%s3902_s3 + $0x238] sm:$0xff] }
 0x128   :  { %v448_v9 = vmax.f32 %v285_v2, %v287_v8  ;;  %v424_v10 = vpop.f32.mrb[19].mxu1  ;;  %v2585_v0 = vpack.c.bf16 %v1653_v62, %v1652_v58  ;;  %v2615_v8 = vpack.c.bf16 %v1673_v4, %v1672_v3  ;;  %v1686_v58 = vld [vmem:[%s3902_s3 + $0x340] sm:$0xff]  ;;  %v1687_v62 = vld [vmem:[%s3902_s3 + $0x348] sm:$0xff] }
 0x129   :  { %v3414_v14 = vadd.f32 %v3272_v13, %v471_v6  ;;  %v460_v15 = vmax.f32 %v422_v7, %v424_v10  ;;  %v1656_v7 = vld [vmem:[%s3902_s3 + $0x250] sm:$0xff]  ;;  %v1674_v10 = vld [vmem:[%s3902_s3 + $0x2e0] sm:$0xff]  ;;  %v1707_v4 = vld [vmem:[%s3902_s3 + $0x3e8] sm:$0xff] }
 0x12a   :  { %2547 = vmatpush3.bf16.msra.mxu0 %v2546_v63  ;;  %2574 = vmatpush3.bf16.msra.mxu1 %v2573_v1  ;;  %v291_v20 = vpop.f32.mrb[20].mxu0  ;;  %v1671_v63 = vld [vmem:[%s3902_s3 + $0x2c8] sm:$0xff]  ;;  %v1654_v1 = vld [vmem:[%s3902_s3 + $0x240] sm:$0xff] }
 0x12b   :  { %2548 = vmatprep.subr.bf16.mxu0 %v2770_v11  ;;  %2599 = vmatprep.subr.bf16.mxu1 %v2770_v11  ;;  %v472_v25 = vmax.f32 %v448_v9, %v460_v15  ;;  %v428_v26 = vpop.f32.mrb[20].mxu1  ;;  %v293_v27 = vpop.f32.mrb[21].mxu0  ;;  %v2588_v6 = vpack.c.bf16 %v1655_v59, %v1654_v1  ;;  %v1657_v9 = vld [vmem:[%s3902_s3 + $0x258] sm:$0xff]  ;;  %v1688_v1 = vld [vmem:[%s3902_s3 + $0x350] sm:$0xff]  ;;  %v1706_v3 = vld [vmem:[%s3902_s3 + $0x3e0] sm:$0xff] }
 0x12c   :  { %v449_v46 = vmax.f32 %v291_v20, %v293_v27  ;;  %v430_v28 = vpop.f32.mrb[21].mxu1  ;;  %v2591_v15 = vpack.c.bf16 %v1657_v9, %v1656_v7  ;;  %v1676_v20 = vld [vmem:[%s3902_s3 + $0x2f0] sm:$0xff]  ;;  %v1695_v27 = vld [vmem:[%s3902_s3 + $0x388] sm:$0xff]  ;;  %v1689_v59 = vld [vmem:[%s3902_s3 + $0x358] sm:$0xff] }
 0x12d   :  { %2117 = vmatmul.mubr.f32.vlgmr.msra.gmra.mrb[26].mxu1 %v497_v12  ;;  %v3433_v29 = vadd.f32 %v3272_v13, %v472_v25  ;;  %v461_v31 = vmax.f32 %v428_v26, %v430_v28  ;;  %v1675_v12 = vld [vmem:[%s3902_s3 + $0x2e8] sm:$0xff]  ;;  %v2621_v24 = vpack.c.bf16 %v1677_v21, %v1676_v20  ;;  %v1661_v25 = vld [vmem:[%s3902_s3 + $0x278] sm:$0xff]  ;;  %v1694_v26 = vld [vmem:[%s3902_s3 + $0x380] sm:$0xff] }
 0x12e   :  { %2550 = vmatpush3.bf16.msra.mxu0 %v2549_v17  ;;  %2601 = vmatpush3.bf16.msra.mxu1 %v2600_v19  ;;  %v297_v35 = vpop.f32.mrb[22].mxu0  ;;  %v1658_v17 = vld [vmem:[%s3902_s3 + $0x260] sm:$0xff]  ;;  %v2618_v18 = vpack.c.bf16 %v1675_v12, %v1674_v10  ;;  %v1659_v19 = vld [vmem:[%s3902_s3 + $0x268] sm:$0xff]  ;;  %v2597_v28 = vpack.c.bf16 %v1661_v25, %v1660_v23  ;;  %v1708_v10 = vld [vmem:[%s3902_s3 + $0x3f0] sm:$0xff] }
 0x12f   :  { %2575 = vmatprep.subr.bf16.mxu0 %v2770_v11  ;;  %2602 = vmatprep.subr.bf16.mxu1 %v2770_v11  ;;  %v473_v40 = vmax.f32 %v449_v46, %v461_v31  ;;  %v434_v41 = vpop.f32.mrb[22].mxu1  ;;  %v299_v42 = vpop.f32.mrb[23].mxu0  ;;  %v2594_v22 = vpack.c.bf16 %v1659_v19, %v1658_v17  ;;  %v499_v46 = vmax.f32 %v3361_v30, 0.0  ;;  %v1678_v31 = vld [vmem:[%s3902_s3 + $0x300] sm:$0xff]  ;;  %v1696_v30 = vld [vmem:[%s3902_s3 + $0x390] sm:$0xff]  ;;  %v1691_v9 = vld [vmem:[%s3902_s3 + $0x368] sm:$0xff] }
 0x130   :  { %2186 = vmatprep.mubr.msk.f32.mxu1 %vm2771_vm1, %v2772_v5  ;;  %v450_v43 = vmax.f32 %v297_v35, %v299_v42  ;;  %v436_v45 = vpop.f32.mrb[23].mxu1  ;;  %v2624_v35 = vpack.c.bf16 %v1679_v33, %v1678_v31  ;;  %v1682_v42 = vld [vmem:[%s3902_s3 + $0x320] sm:$0xff]  ;;  %v1709_v12 = vld [vmem:[%s3902_s3 + $0x3f8] sm:$0xff]  ;;  %v1692_v17 = vld [vmem:[%s3902_s3 + $0x370] sm:$0xff] }
 0x131   :  { %2082 = vmatmul.mubr.f32.vlgmr.msra.gmra.mrb[26].mxu0 %v496_v36  ;;  %v3452_v47 = vadd.f32 %v3272_v13, %v473_v40  ;;  %v462_v48 = vmax.f32 %v434_v41, %v436_v45  ;;  %v1680_v36 = vld [vmem:[%s3902_s3 + $0x310] sm:$0xff]  ;;  %v1698_v40 = vld [vmem:[%s3902_s3 + $0x3a0] sm:$0xff]  ;;  %v1699_v41 = vld [vmem:[%s3902_s3 + $0x3a8] sm:$0xff] }
 0x132   :  { %2577 = vmatpush3.bf16.msra.mxu0 %v2576_v32  ;;  %2604 = vmatpush3.bf16.msra.mxu1 %v2603_v34  ;;  %v2648_v32 = vpack.c.bf16 %v1695_v27, %v1694_v26  ;;  %v1697_v34 = vld [vmem:[%s3902_s3 + $0x398] sm:$0xff]  ;;  %v2627_v16 = vpack.c.bf16 %v1681_v39, %v1680_v36  ;;  %v1683_v45 = vld [vmem:[%s3902_s3 + $0x328] sm:$0xff]  ;;  %v1690_v7 = vld [vmem:[%s3902_s3 + $0x360] sm:$0xff] }
 0x133   :  { %2578 = vmatprep.subr.bf16.mxu0 %v2770_v11  ;;  %2605 = vmatprep.subr.bf16.mxu1 %v2770_v11  ;;  %v474_v55 = vmax.f32 %v450_v43, %v462_v48  ;;  %v2651_v37 = vpack.c.bf16 %v1697_v34, %v1696_v30  ;;  %v2654_v43 = vpack.c.bf16 %v1699_v41, %v1698_v40  ;;  %v1700_v48 = vld [vmem:[%s3902_s3 + $0x3b0] sm:$0xff]  ;;  %v1693_v19 = vld [vmem:[%s3902_s3 + $0x378] sm:$0xff]  ;;  %v1726_v20 = vld [vmem:[%s3902_s3 + $0x480] sm:$0xff] }
 0x134   :  { %2151 = vmatprep.mubr.msk.f32.mxu0 %vm2771_vm1, %v2772_v5  ;;  %v2630_v50 = vpack.c.bf16 %v1683_v45, %v1682_v42  ;;  %v1727_v21 = vld [vmem:[%s3902_s3 + $0x488] sm:$0xff]  ;;  %v2645_v23 = vpack.c.bf16 %v1693_v19, %v1692_v17  ;;  %v1729_v27 = vld [vmem:[%s3902_s3 + $0x498] sm:$0xff]  ;;  %v1730_v30 = vld [vmem:[%s3902_s3 + $0x4a0] sm:$0xff] }
 0x135   :  { %v3471_v56 = vadd.f32 %v3272_v13, %v474_v55  ;;  %v1670_v13 = vld [vmem:[%s3902_s3 + $0x2c0] sm:$0xff]  ;;  %v1703_v55 = vld [vmem:[%s3902_s3 + $0x3c8] sm:$0xff]  ;;  %v2696_v25 = vpack.c.bf16 %v1727_v21, %v1726_v20  ;;  %v1713_v33 = vld [vmem:[%s3902_s3 + $0x418] sm:$0xff] }
 0x136   :  { %2580 = vmatpush3.bf16.msra.mxu0 %v2579_v49  ;;  %2607 = vmatpush3.bf16.msra.mxu1 %v2606_v51  ;;  %v2612_v2 = vpack.c.bf16 %v1671_v63, %v1670_v13  ;;  %v1701_v49 = vld [vmem:[%s3902_s3 + $0x3b8] sm:$0xff]  ;;  %v1684_v51 = vld [vmem:[%s3902_s3 + $0x330] sm:$0xff]  ;;  %v1711_v26 = vld [vmem:[%s3902_s3 + $0x408] sm:$0xff] }
 0x137   :  { %2581 = vmatprep.subr.bf16.mxu0 %v2770_v11  ;;  %2608 = vmatprep.subr.bf16.mxu1 %v2770_v11  ;;  %v2657_v52 = vpack.c.bf16 %v1701_v49, %v1700_v48  ;;  %v1704_v13 = vld [vmem:[%s3902_s3 + $0x3d0] sm:$0xff]  ;;  %v1705_v63 = vld [vmem:[%s3902_s3 + $0x3d8] sm:$0xff]  ;;  %v1731_v34 = vld [vmem:[%s3902_s3 + $0x4a8] sm:$0xff] }
 0x138   :  { %v2702_v36 = vpack.c.bf16 %v1731_v34, %v1730_v30  ;;  %v1733_v39 = vld [vmem:[%s3902_s3 + $0x4b8] sm:$0xff]  ;;  %v1716_v41 = vld [vmem:[%s3902_s3 + $0x430] sm:$0xff]  ;;  %v1735_v45 = vld [vmem:[%s3902_s3 + $0x4c8] sm:$0xff] }
 0x139   :  { %v1717_v42 = vld [vmem:[%s3902_s3 + $0x438] sm:$0xff]  ;;  %v1718_v49 = vld [vmem:[%s3902_s3 + $0x440] sm:$0xff]  ;;  %v1744_v21 = vld [vmem:[%s3902_s3 + $0x510] sm:$0xff] }
 0x13a   :  { %2583 = vmatpush3.bf16.msra.mxu0 %v2582_v57  ;;  %2610 = vmatpush3.bf16.msra.mxu1 %v2609_v60  ;;  %v2633_v57 = vpack.c.bf16 %v1685_v53, %v1684_v51  ;;  %v2660_v60 = vpack.c.bf16 %v1703_v55, %v1702_v54  ;;  %v2681_v48 = vpack.c.bf16 %v1717_v42, %v1716_v41  ;;  %v1719_v51 = vld [vmem:[%s3902_s3 + $0x448] sm:$0xff]  ;;  %v1737_v53 = vld [vmem:[%s3902_s3 + $0x4d8] sm:$0xff]  ;;  %v1720_v55 = vld [vmem:[%s3902_s3 + $0x450] sm:$0xff] }
 0x13b   :  { %2584 = vmatprep.subr.bf16.mxu0 %v2770_v11  ;;  %2611 = vmatprep.subr.bf16.mxu1 %v2770_v11  ;;  %v2684_v54 = vpack.c.bf16 %v1719_v51, %v1718_v49  ;;  %v1761_v19 = vld [vmem:[%s3902_s3 + $0x598] sm:$0xff] }
 0x13c   :  { %v1749_v34 = vld [vmem:[%s3902_s3 + $0x538] sm:$0xff] }
 0x13e   :  { %2586 = vmatpush3.bf16.msra.mxu0 %v2585_v0  ;;  %2613 = vmatpush3.bf16.msra.mxu1 %v2612_v2  ;;  %v2636_v0 = vpack.c.bf16 %v1687_v62, %v1686_v58  ;;  %v2663_v2 = vpack.c.bf16 %v1705_v63, %v1704_v13  ;;  %v1721_v58 = vld [vmem:[%s3902_s3 + $0x458] sm:$0xff]  ;;  %v1739_v62 = vld [vmem:[%s3902_s3 + $0x4e8] sm:$0xff]  ;;  %v1722_v63 = vld [vmem:[%s3902_s3 + $0x460] sm:$0xff] }
 0x13f   :  { %2587 = vmatprep.subr.bf16.mxu0 %v2770_v11  ;;  %2614 = vmatprep.subr.bf16.mxu1 %v2770_v11  ;;  %v2687_v13 = vpack.c.bf16 %v1721_v58, %v1720_v55  ;;  %v1756_v58 = vld [vmem:[%s3902_s3 + $0x570] sm:$0xff] }
 0x142   :  { %2589 = vmatpush3.bf16.msra.mxu0 %v2588_v6  ;;  %2616 = vmatpush3.bf16.msra.mxu1 %v2615_v8  ;;  %v2639_v6 = vpack.c.bf16 %v1689_v59, %v1688_v1  ;;  %v2666_v8 = vpack.c.bf16 %v1707_v4, %v1706_v3  ;;  %v1723_v1 = vld [vmem:[%s3902_s3 + $0x468] sm:$0xff]  ;;  %v1741_v59 = vld [vmem:[%s3902_s3 + $0x4f8] sm:$0xff]  ;;  %v1724_v4 = vld [vmem:[%s3902_s3 + $0x470] sm:$0xff] }
 0x143   :  { %2590 = vmatprep.subr.bf16.mxu0 %v2770_v11  ;;  %2617 = vmatprep.subr.bf16.mxu1 %v2770_v11  ;;  %v2690_v3 = vpack.c.bf16 %v1723_v1, %v1722_v63  ;;  %v504_v63 = vmax.f32 %v3452_v47, 0.0 }
 0x146   :  { %2592 = vmatpush3.bf16.msra.mxu0 %v2591_v15  ;;  %2619 = vmatpush3.bf16.msra.mxu1 %v2618_v18  ;;  %v2642_v15 = vpack.c.bf16 %v1691_v9, %v1690_v7  ;;  %v2669_v18 = vpack.c.bf16 %v1709_v12, %v1708_v10  ;;  %v1725_v7 = vld [vmem:[%s3902_s3 + $0x478] sm:$0xff]  ;;  %v1759_v9 = vld [vmem:[%s3902_s3 + $0x588] sm:$0xff]  ;;  %v503_v10 = vmax.f32 %v3433_v29, 0.0  ;;  %v1760_v29 = vld [vmem:[%s3902_s3 + $0x590] sm:$0xff] }
 0x147   :  { %2593 = vmatprep.subr.bf16.mxu0 %v2770_v11  ;;  %2620 = vmatprep.subr.bf16.mxu1 %v2770_v11  ;;  %v2693_v12 = vpack.c.bf16 %v1725_v7, %v1724_v4 }
 0x14a   :  { %2595 = vmatpush3.bf16.msra.mxu0 %v2594_v22  ;;  %2622 = vmatpush3.bf16.msra.mxu1 %v2621_v24  ;;  %v501_v22 = vmax.f32 %v3397_v61, 0.0  ;;  %v1710_v24 = vld [vmem:[%s3902_s3 + $0x400] sm:$0xff]  ;;  %v1728_v61 = vld [vmem:[%s3902_s3 + $0x490] sm:$0xff] }
 0x14b   :  { %2596 = vmatprep.subr.bf16.mxu0 %v2770_v11  ;;  %2647 = vmatprep.subr.bf16.mxu1 %v2770_v11  ;;  %v2699_v31 = vpack.c.bf16 %v1729_v27, %v1728_v61  ;;  %v1746_v61 = vld [vmem:[%s3902_s3 + $0x520] sm:$0xff] }
 0x14d   :  { %2187 = vmatmul.mubr.f32.vlgmr.msra.gmra.mrb[28].mxu1 %v499_v46  ;;  %v2672_v46 = vpack.c.bf16 %v1711_v26, %v1710_v24  ;;  %v1745_v24 = vld [vmem:[%s3902_s3 + $0x518] sm:$0xff]  ;;  %v1763_v26 = vld [vmem:[%s3902_s3 + $0x5a8] sm:$0xff] }
 0x14e   :  { %2598 = vmatpush3.bf16.msra.mxu0 %v2597_v28  ;;  %2649 = vmatpush3.bf16.msra.mxu1 %v2648_v32  ;;  %v1712_v28 = vld [vmem:[%s3902_s3 + $0x410] sm:$0xff]  ;;  %v500_v32 = vmax.f32 %v3378_v44, 0.0 }
 0x14f   :  { %2623 = vmatprep.subr.bf16.mxu0 %v2770_v11  ;;  %2650 = vmatprep.subr.bf16.mxu1 %v2770_v11  ;;  %v2675_v44 = vpack.c.bf16 %v1713_v33, %v1712_v28  ;;  %v1764_v28 = vld [vmem:[%s3902_s3 + $0x5b0] sm:$0xff] }
 0x150   :  { %2256 = vmatprep.mubr.msk.f32.mxu1 %vm2771_vm1, %v2772_v5  ;;  %v1748_v33 = vld [vmem:[%s3902_s3 + $0x530] sm:$0xff] }
 0x151   :  { %2152 = vmatmul.mubr.f32.vlgmr.msra.gmra.mrb[28].mxu0 %v498_v38  ;;  %v1732_v38 = vld [vmem:[%s3902_s3 + $0x4b0] sm:$0xff] }
 0x152   :  { %2625 = vmatpush3.bf16.msra.mxu0 %v2624_v35  ;;  %2652 = vmatpush3.bf16.msra.mxu1 %v2651_v37  ;;  %v1714_v35 = vld [vmem:[%s3902_s3 + $0x420] sm:$0xff]  ;;  %v1715_v37 = vld [vmem:[%s3902_s3 + $0x428] sm:$0xff] }
 0x153   :  { %2626 = vmatprep.subr.bf16.mxu0 %v2770_v11  ;;  %2653 = vmatprep.subr.bf16.mxu1 %v2770_v11  ;;  %v2678_v40 = vpack.c.bf16 %v1715_v37, %v1714_v35  ;;  %v2729_v35 = vpack.c.bf16 %v1749_v34, %v1748_v33  ;;  %v1774_v33 = vld [vmem:[%s3904_s4] ss:$0 sm:$0xff] }
 0x154   :  { %2221 = vmatprep.mubr.msk.f32.mxu0 %vm2771_vm1, %v2772_v5 }
 0x156   :  { %2628 = vmatpush3.bf16.msra.mxu0 %v2627_v16  ;;  %2655 = vmatpush3.bf16.msra.mxu1 %v2654_v43  ;;  %v2705_v16 = vpack.c.bf16 %v1733_v39, %v1732_v38  ;;  %v1734_v43 = vld [vmem:[%s3902_s3 + $0x4c0] sm:$0xff]  ;;  %v1751_v38 = vld [vmem:[%s3902_s3 + $0x548] sm:$0xff]  ;;  %v1768_v39 = vld [vmem:[%s3902_s3 + $0x5d0] sm:$0xff] }
 0x157   :  { %2629 = vmatprep.subr.bf16.mxu0 %v2770_v11  ;;  %2656 = vmatprep.subr.bf16.mxu1 %v2770_v11 }
 0x15a   :  { %2631 = vmatpush3.bf16.msra.mxu0 %v2630_v50  ;;  %2658 = vmatpush3.bf16.msra.mxu1 %v2657_v52  ;;  %v2708_v50 = vpack.c.bf16 %v1735_v45, %v1734_v43  ;;  %v1736_v52 = vld [vmem:[%s3902_s3 + $0x4d0] sm:$0xff]  ;;  %v1753_v43 = vld [vmem:[%s3902_s3 + $0x558] sm:$0xff]  ;;  %v1770_v45 = vld [vmem:[%s3902_s3 + $0x5e0] sm:$0xff] }
 0x15b   :  { %2632 = vmatprep.subr.bf16.mxu0 %v2770_v11  ;;  %2659 = vmatprep.subr.bf16.mxu1 %v2770_v11 }
 0x15e   :  { %2634 = vmatpush3.bf16.msra.mxu0 %v2633_v57  ;;  %2661 = vmatpush3.bf16.msra.mxu1 %v2660_v60  ;;  %v2711_v57 = vpack.c.bf16 %v1737_v53, %v1736_v52  ;;  %v1738_v60 = vld [vmem:[%s3902_s3 + $0x4e0] sm:$0xff]  ;;  %v1755_v52 = vld [vmem:[%s3902_s3 + $0x568] sm:$0xff]  ;;  %v1772_v53 = vld [vmem:[%s3902_s3 + $0x5f0] sm:$0xff] }
 0x15f   :  { %2635 = vmatprep.subr.bf16.mxu0 %v2770_v11  ;;  %2662 = vmatprep.subr.bf16.mxu1 %v2770_v11 }
 0x162   :  { %2637 = vmatpush3.bf16.msra.mxu0 %v2636_v0  ;;  %2664 = vmatpush3.bf16.msra.mxu1 %v2663_v2  ;;  %v2714_v0 = vpack.c.bf16 %v1739_v62, %v1738_v60  ;;  %v1740_v2 = vld [vmem:[%s3902_s3 + $0x4f0] sm:$0xff]  ;;  %v1757_v60 = vld [vmem:[%s3902_s3 + $0x578] sm:$0xff]  ;;  %v505_v62 = vmax.f32 %v3471_v56, 0.0 }
 0x163   :  { %2638 = vmatprep.subr.bf16.mxu0 %v2770_v11  ;;  %2665 = vmatprep.subr.bf16.mxu1 %v2770_v11 }
 0x166   :  { %2640 = vmatpush3.bf16.msra.mxu0 %v2639_v6  ;;  %2667 = vmatpush3.bf16.msra.mxu1 %v2666_v8  ;;  %v2717_v6 = vpack.c.bf16 %v1741_v59, %v1740_v2  ;;  %v1758_v8 = vld [vmem:[%s3902_s3 + $0x580] sm:$0xff] }
 0x167   :  { %2641 = vmatprep.subr.bf16.mxu0 %v2770_v11  ;;  %2668 = vmatprep.subr.bf16.mxu1 %v2770_v11  ;;  %v2744_v17 = vpack.c.bf16 %v1759_v9, %v1758_v8 }
 0x16a   :  { %2643 = vmatpush3.bf16.msra.mxu0 %v2642_v15  ;;  %2670 = vmatpush3.bf16.msra.mxu1 %v2669_v18  ;;  %v1742_v15 = vld [vmem:[%s3902_s3 + $0x500] sm:$0xff]  ;;  %v1743_v18 = vld [vmem:[%s3902_s3 + $0x508] sm:$0xff] }
 0x16b   :  { %2644 = vmatprep.subr.bf16.mxu0 %v2770_v11  ;;  %2695 = vmatprep.subr.bf16.mxu1 %v2770_v11  ;;  %v2720_v20 = vpack.c.bf16 %v1743_v18, %v1742_v15 }
 0x16d   :  { %2257 = vmatmul.mubr.f32.vlgmr.msra.gmra.mrb[30].mxu1 %v501_v22  ;;  %v2747_v22 = vpack.c.bf16 %v1761_v19, %v1760_v29 }
 0x16e   :  { %2646 = vmatpush3.bf16.msra.mxu0 %v2645_v23  ;;  %2697 = vmatpush3.bf16.msra.mxu1 %v2696_v25  ;;  %v502_v23 = vmax.f32 %v3414_v14, 0.0  ;;  %v1762_v25 = vld [vmem:[%s3902_s3 + $0x5a0] sm:$0xff]  ;;  %v2723_v14 = vpack.c.bf16 %v1745_v24, %v1744_v21 }
 0x16f   :  { %2671 = vmatprep.subr.bf16.mxu0 %v2770_v11  ;;  %2698 = vmatprep.subr.bf16.mxu1 %v2770_v11  ;;  %v2750_v27 = vpack.c.bf16 %v1763_v26, %v1762_v25 }
 0x170   :  { %2326 = vmatprep.mubr.msk.f32.mxu1 %vm2771_vm1, %v2772_v5 }
 0x171   :  { %2222 = vmatmul.mubr.f32.vlgmr.msra.gmra.mrb[30].mxu0 %v500_v32 }
 0x172   :  { %2673 = vmatpush3.bf16.msra.mxu0 %v2672_v46  ;;  %2700 = vmatpush3.bf16.msra.mxu1 %v2699_v31  ;;  %v1747_v46 = vld [vmem:[%s3902_s3 + $0x528] sm:$0xff]  ;;  %v1765_v31 = vld [vmem:[%s3902_s3 + $0x5b8] sm:$0xff] }
 0x173   :  { %2674 = vmatprep.subr.bf16.mxu0 %v2770_v11  ;;  %2701 = vmatprep.subr.bf16.mxu1 %v2770_v11  ;;  %v2726_v32 = vpack.c.bf16 %v1747_v46, %v1746_v61  ;;  %v2753_v30 = vpack.c.bf16 %v1765_v31, %v1764_v28 }
 0x174   :  { %2291 = vmatprep.mubr.msk.f32.mxu0 %vm2771_vm1, %v2772_v5 }
 0x176   :  { %2676 = vmatpush3.bf16.msra.mxu0 %v2675_v44  ;;  %2703 = vmatpush3.bf16.msra.mxu1 %v2702_v36  ;;  %v1767_v44 = vld [vmem:[%s3902_s3 + $0x5c8] sm:$0xff]  ;;  %v1750_v36 = vld [vmem:[%s3902_s3 + $0x540] sm:$0xff] }
 0x177   :  { %2677 = vmatprep.subr.bf16.mxu0 %v2770_v11  ;;  %2704 = vmatprep.subr.bf16.mxu1 %v2770_v11  ;;  %v2732_v41 = vpack.c.bf16 %v1751_v38, %v1750_v36 }
 0x17a   :  { %2679 = vmatpush3.bf16.msra.mxu0 %v2678_v40  ;;  %2706 = vmatpush3.bf16.msra.mxu1 %v2705_v16  ;;  %v1769_v40 = vld [vmem:[%s3902_s3 + $0x5d8] sm:$0xff]  ;;  %v1752_v16 = vld [vmem:[%s3902_s3 + $0x550] sm:$0xff] }
 0x17b   :  { %2680 = vmatprep.subr.bf16.mxu0 %v2770_v11  ;;  %2707 = vmatprep.subr.bf16.mxu1 %v2770_v11  ;;  %v2759_v42 = vpack.c.bf16 %v1769_v40, %v1768_v39  ;;  %v2735_v49 = vpack.c.bf16 %v1753_v43, %v1752_v16 }
 0x17e   :  { %2682 = vmatpush3.bf16.msra.mxu0 %v2681_v48  ;;  %2709 = vmatpush3.bf16.msra.mxu1 %v2708_v50  ;;  %v1771_v48 = vld [vmem:[%s3902_s3 + $0x5e8] sm:$0xff]  ;;  %v1754_v50 = vld [vmem:[%s3902_s3 + $0x560] sm:$0xff] }
 0x17f   :  { %2683 = vmatprep.subr.bf16.mxu0 %v2770_v11  ;;  %2710 = vmatprep.subr.bf16.mxu1 %v2770_v11  ;;  %v2762_v51 = vpack.c.bf16 %v1771_v48, %v1770_v45  ;;  %v2738_v55 = vpack.c.bf16 %v1755_v52, %v1754_v50 }
 0x182   :  { %2685 = vmatpush3.bf16.msra.mxu0 %v2684_v54  ;;  %2712 = vmatpush3.bf16.msra.mxu1 %v2711_v57  ;;  %v1773_v54 = vld [vmem:[%s3902_s3 + $0x5f8] sm:$0xff] }
 0x183   :  { %2686 = vmatprep.subr.bf16.mxu0 %v2770_v11  ;;  %2713 = vmatprep.subr.bf16.mxu1 %v2770_v11  ;;  %v2765_v57 = vpack.c.bf16 %v1773_v54, %v1772_v53 }
 0x186   :  { %2688 = vmatpush3.bf16.msra.mxu0 %v2687_v13  ;;  %2715 = vmatpush3.bf16.msra.mxu1 %v2714_v0  ;;  %v2741_v13 = vpack.c.bf16 %v1757_v60, %v1756_v58 }
 0x187   :  { %2689 = vmatprep.subr.bf16.mxu0 %v2770_v11  ;;  %2716 = vmatprep.subr.bf16.mxu1 %v2770_v11 }
 0x18a   :  { %2691 = vmatpush3.bf16.msra.mxu0 %v2690_v3  ;;  %2718 = vmatpush3.bf16.msra.mxu1 %v2717_v6 }
 0x18b   :  { %2692 = vmatprep.subr.bf16.mxu0 %v2770_v11  ;;  %2743 = vmatprep.subr.bf16.mxu1 %v2770_v11 }
 0x18d   :  { %2327 = vmatmul.mubr.f32.vlgmr.msra.gmra.mrb[32].mxu1 %v503_v10 }
 0x18e   :  { %2694 = vmatpush3.bf16.msra.mxu0 %v2693_v12  ;;  %2745 = vmatpush3.bf16.msra.mxu1 %v2744_v17 }
 0x18f   :  { %2719 = vmatprep.subr.bf16.mxu0 %v2770_v11  ;;  %2746 = vmatprep.subr.bf16.mxu1 %v2770_v11 }
 0x190   :  { %2396 = vmatprep.mubr.msk.f32.mxu1 %vm2771_vm1, %v2772_v5 }
 0x191   :  { %2292 = vmatmul.mubr.f32.vlgmr.msra.gmra.mrb[32].mxu0 %v502_v23 }
 0x192   :  { %2721 = vmatpush3.bf16.msra.mxu0 %v2720_v20  ;;  %2748 = vmatpush3.bf16.msra.mxu1 %v2747_v22 }
 0x193   :  { %2722 = vmatprep.subr.bf16.mxu0 %v2770_v11  ;;  %2749 = vmatprep.subr.bf16.mxu1 %v2770_v11 }
 0x194   :  { %2361 = vmatprep.mubr.msk.f32.mxu0 %vm2771_vm1, %v2772_v5  ;;  %v1766_v5 = vld [vmem:[%s3902_s3 + $0x5c0] sm:$0xff] }
 0x195   :  { %v2756_v37 = vpack.c.bf16 %v1767_v44, %v1766_v5 }
 0x196   :  { %2724 = vmatpush3.bf16.msra.mxu0 %v2723_v14  ;;  %2751 = vmatpush3.bf16.msra.mxu1 %v2750_v27 }
 0x197   :  { %2725 = vmatprep.subr.bf16.mxu0 %v2770_v11  ;;  %2752 = vmatprep.subr.bf16.mxu1 %v2770_v11 }
 0x19a   :  { %2727 = vmatpush3.bf16.msra.mxu0 %v2726_v32  ;;  %2754 = vmatpush3.bf16.msra.mxu1 %v2753_v30 }
 0x19b   :  { %2728 = vmatprep.subr.bf16.mxu0 %v2770_v11  ;;  %2755 = vmatprep.subr.bf16.mxu1 %v2770_v11 }
 0x19e   :  { %2730 = vmatpush3.bf16.msra.mxu0 %v2729_v35  ;;  %2757 = vmatpush3.bf16.msra.mxu1 %v2756_v37 }
 0x19f   :  { %2731 = vmatprep.subr.bf16.mxu0 %v2770_v11  ;;  %2758 = vmatprep.subr.bf16.mxu1 %v2770_v11 }
 0x1a2   :  { %2733 = vmatpush3.bf16.msra.mxu0 %v2732_v41  ;;  %2760 = vmatpush3.bf16.msra.mxu1 %v2759_v42 }
 0x1a3   :  { %2734 = vmatprep.subr.bf16.mxu0 %v2770_v11  ;;  %2761 = vmatprep.subr.bf16.mxu1 %v2770_v11 }
 0x1a6   :  { %2736 = vmatpush3.bf16.msra.mxu0 %v2735_v49  ;;  %2763 = vmatpush3.bf16.msra.mxu1 %v2762_v51 }
 0x1a7   :  { %2737 = vmatprep.subr.bf16.mxu0 %v2770_v11  ;;  %2764 = vmatprep.subr.bf16.mxu1 %v2770_v11 }
 0x1aa   :  { %2739 = vmatpush3.bf16.msra.mxu0 %v2738_v55  ;;  %2766 = vmatpush3.bf16.msra.mxu1 %v2765_v57 }
 0x1ab   :  { %2740 = vmatprep.subr.bf16.mxu0 %v2770_v11 }
 0x1ad   :  { %2397 = vmatmul.mubr.f32.vlgmr.msra.gmra.mrb[34].mxu1 %v505_v62 }
 0x1ae   :  { %2742 = vmatpush3.bf16.msra.mxu0 %v2741_v13 }
 0x1b1   :  { %2362 = vmatmul.mubr.f32.vlgmr.msra.gmra.mrb[34].mxu0 %v504_v63 }
 0x1e0   :  { %v675_v0 = vpop.f32.mrb[24].mxu1 }
 0x1e1   :  { %v2048_v1 = vpop.f32.mrb[25].mxu1 }
 0x1e4   :  { %v605_v2 = vpop.f32.mrb[24].mxu0 }
 0x1e5   :  { %v676_v59 = vadd.f32 %v675_v0, %v605_v2  ;;  %v2013_v3 = vpop.f32.mrb[25].mxu0 }
 0x200   :  { %v850_v4 = vpop.f32.mrb[26].mxu1 }
 0x201   :  { %v2118_v6 = vpop.f32.mrb[27].mxu1 }
 0x204   :  { %v762_v7 = vpop.f32.mrb[26].mxu0 }
 0x205   :  { %v766_v8 = vadd.f32 %v762_v7, %v676_v59  ;;  %v2083_v56 = vpop.f32.mrb[27].mxu0 }
 0x207   :  { %v854_v9 = vadd.f32 %v850_v4, %v766_v8 }
 0x220   :  { %v1026_v10 = vpop.f32.mrb[28].mxu1 }
 0x221   :  { %v2188_v12 = vpop.f32.mrb[29].mxu1 }
 0x224   :  { %v938_v15 = vpop.f32.mrb[28].mxu0 }
 0x225   :  { %v942_v11 = vadd.f32 %v938_v15, %v854_v9  ;;  %v2153_v17 = vpop.f32.mrb[29].mxu0 }
 0x227   :  { %v1030_v18 = vadd.f32 %v1026_v10, %v942_v11 }
 0x240   :  { %v1202_v29 = vpop.f32.mrb[30].mxu1 }
 0x241   :  { %v2258_v47 = vpop.f32.mrb[31].mxu1 }
 0x244   :  { %v1114_v19 = vpop.f32.mrb[30].mxu0 }
 0x245   :  { %v1118_v20 = vadd.f32 %v1114_v19, %v1030_v18  ;;  %v2223_v21 = vpop.f32.mrb[31].mxu0 }
 0x247   :  { %v1206_v22 = vadd.f32 %v1202_v29, %v1118_v20 }
 0x260   :  { %v1378_v23 = vpop.f32.mrb[32].mxu1 }
 0x261   :  { %v2328_v24 = vpop.f32.mrb[33].mxu1 }
 0x264   :  { %v1290_v25 = vpop.f32.mrb[32].mxu0 }
 0x265   :  { %v1294_v26 = vadd.f32 %v1290_v25, %v1206_v22  ;;  %v2293_v14 = vpop.f32.mrb[33].mxu0 }
 0x267   :  { %v1382_v61 = vadd.f32 %v1378_v23, %v1294_v26 }
 0x280   :  { %v1554_v27 = vpop.f32.mrb[34].mxu1 }
 0x281   :  { %v2398_v46 = vpop.f32.mrb[35].mxu1 }
 0x284   :  { %v1466_v28 = vpop.f32.mrb[34].mxu0 }
 0x285   :  { %v1470_v31 = vadd.f32 %v1466_v28, %v1382_v61  ;;  %v2363_v32 = vpop.f32.mrb[35].mxu0 }
 0x287   :  { %v1558_v30 = vadd.f32 %v1554_v27, %v1470_v31 }
 0x289   :  { %v1566_v34 = vadd.f32 %v1774_v33, %v1558_v30 }
 0x28b   :  { %1568 = vst.msk [vmem:[%s3905_s5] sm:$0xff] %vm1567_vm2, %v1566_v34 }

</bundles_post_ra>
